<compile_context>
chip_gen: v5e
topology: v5e:2x2
jax: 0.10.0
libtpu: 0.0.40
codegen_flags: <defaults>
</compile_context>

<pallas_src>
import math
from functools import partial

import jax
import jax.numpy as jnp
from jax.experimental import pallas as pl
from jax.experimental.pallas import tpu as pltpu


_NEG_INF = -1e30
_VMEM_SPEC = pl.BlockSpec(memory_space=pltpu.MemorySpace.VMEM)


# ----------------------------------------------------------------------------
# Fused Pallas kernel: GATConv(H heads, concat) -> ELU -> GATConv(1 head)
# ----------------------------------------------------------------------------
def _gat_kernel(x_ref, adj_ref, w1_ref, a1_ref, b1_ref,
                w2_ref, a2_ref, b2_ref, out_ref, h1_scr):
    """
    x_ref:   (N, F_in)    node features (f32)
    adj_ref: (N, N)       bf16, adj[i, j] = 1 iff edge j->i (self-loops included)
    w1_ref:  (F_in, H*C)  layer-1 linear weight (pre-transposed)
    a1_ref:  (H*C, 2H)    block-diag attention vecs: cols [0..H) = src, [H..2H) = dst
    b1_ref:  (1, H*C)     layer-1 bias
    w2_ref:  (H*C, OP)    layer-2 linear weight, O padded to OP=128 (zero cols)
    a2_ref:  (OP, 2)      layer-2 attention vecs (zero rows past O): col0=src, col1=dst
    b2_ref:  (1, OP)      layer-2 bias (padded)
    out_ref: (N, OP)      lane-dense padded output
    h1_scr:  (N, H*C)     VMEM scratch accumulating per-head outputs
    """
    HC = w1_ref.shape[1]
    H = a1_ref.shape[1] // 2
    C = HC // H

    # Hoisted mask bias: one (N,N) select, shared by all H+1 softmaxes.
    neg_bias = jnp.where(adj_ref[...].astype(jnp.float32) > 0.0,
                         jnp.float32(0.0), jnp.float32(_NEG_INF))

    def masked_softmax(row_src, col_dst):
        # e[i, j] = LeakyReLU(s_dst[i] + s_src[j]); softmax over j restricted to edges.
        e = col_dst + row_src                              # (N,1)+(1,N) -> (N,N)
        e = jnp.where(e > 0.0, e, 0.2 * e)                 # LeakyReLU(0.2)
        e = e + neg_bias                                   # masked -> ~-1e30
        e_max = jnp.max(e, axis=-1, keepdims=True)         # finite (self-loops)
        p = jnp.exp(e - e_max)                             # masked entries underflow to 0
        denom = jnp.sum(p, axis=-1, keepdims=True)
        return p * pl.reciprocal(denom, approx=True)       # EUP recip + VPU mul

    # ---- GATConv 1: H heads, concat=True ----
    xp = jnp.dot(x_ref[...], w1_ref[...],
                 preferred_element_type=jnp.float32)       # (N, H*C)
    s1 = jnp.dot(xp, a1_ref[...],
                 preferred_element_type=jnp.float32)       # (N, 2H) = [src | dst] scores
    s1_t = jnp.transpose(s1)                               # (2H, N)

    for h in range(H):                                     # static unrolled head loop
        attn_h = masked_softmax(s1_t[h:h + 1, :],          # src scores as a row
                                s1[:, H + h:H + h + 1])    # dst scores as a column
        h1_scr[:, h * C:(h + 1) * C] = jnp.dot(
            attn_h.astype(jnp.bfloat16),
            xp[:, h * C:(h + 1) * C].astype(jnp.bfloat16),
            preferred_element_type=jnp.float32)

    h1 = h1_scr[...] + b1_ref[...]                         # (N, H*C), lane-dense
    # ELU(alpha=1); exp(min(.,0)) keeps the discarded branch overflow-free.
    h1 = jnp.where(h1 > 0.0, h1, jnp.exp(jnp.minimum(h1, 0.0)) - 1.0)
    # TODO(synk): nn.Dropout / GATConv attention dropout are train-time stochastic
    #             ops; inference (eval) mode = identity, which is what is implemented.

    # ---- GATConv 2: 1 head, concat=False (mean over the single head == identity) ----
    xp2 = jnp.dot(h1, w2_ref[...], preferred_element_type=jnp.float32)   # (N, OP)
    s2 = jnp.dot(xp2, a2_ref[...], preferred_element_type=jnp.float32)   # (N, 2)
    s2_t = jnp.transpose(s2)                                             # (2, N)
    attn2 = masked_softmax(s2_t[0:1, :], s2[:, 1:2])                     # (N, N)
    out_ref[...] = jnp.dot(attn2.astype(jnp.bfloat16),
                           xp2.astype(jnp.bfloat16),
                           preferred_element_type=jnp.float32) + b2_ref[...]


# ----------------------------------------------------------------------------
# Wrapper: edge_index -> dense bf16 adjacency (self-loops fused), one pallas_call
# ----------------------------------------------------------------------------
@partial(jax.jit, static_argnames=("out_dim",))
def gat_forward(x, edge_index, params, out_dim):
    """x: (N, F_in) f32; edge_index: (2, E) int32 [src; dst]. Returns (N, out_dim)."""
    N = x.shape[0]
    HC = params["w1"].shape[1]
    OP = params["w2"].shape[1]          # lane-padded output width (multiple of 128)

    # adj[i, j] = 1 iff edge j -> i; self-loops fused into the same scatter (PyG default).
    src, dst = edge_index[0], edge_index[1]
    loops = jnp.arange(N, dtype=edge_index.dtype)
    src = jnp.concatenate([src, loops])
    dst = jnp.concatenate([dst, loops])
    adj = jnp.zeros((N, N), jnp.bfloat16).at[dst, src].set(
        jnp.ones_like(dst, dtype=jnp.bfloat16))

    # Raise the scoped-VMEM limit above the default (16/32 MiB) for larger N.
    vmem_bytes = int(min(100 * 1024 * 1024,
                         max(32 * 1024 * 1024, 16 * 4 * N * N)))

    out_padded = pl.pallas_call(
        _gat_kernel,
        out_shape=jax.ShapeDtypeStruct((N, OP), jnp.float32),
        in_specs=[_VMEM_SPEC] * 8,
        out_specs=_VMEM_SPEC,
        scratch_shapes=[pltpu.VMEM((N, HC), jnp.float32)],
        compiler_params=pltpu.CompilerParams(vmem_limit_bytes=vmem_bytes),
    )(x, adj, params["w1"], params["a1"], params["b1"],
      params["w2"], params["a2"], params["b2"])
    return out_padded[:, :out_dim]


# ----------------------------------------------------------------------------
# Parameter init - stored directly in the kernel's layout (no per-forward prep)
# ----------------------------------------------------------------------------
def init_params(key, in_dim, hidden_dim, out_dim, num_heads):
    H, C = num_heads, hidden_dim
    HC = H * C
    OP = max(128, -(-out_dim // 128) * 128)   # lane-dense padded output width

    def glorot(k, shape, fan_in, fan_out):
        lim = math.sqrt(6.0 / (fan_in + fan_out))
        return jax.random.uniform(k, shape, jnp.float32, -lim, lim)

    key, k1, k2, k3, k4, k5, k6 = jax.random.split(key, 7)
    w1 = glorot(k1, (in_dim, HC), in_dim, HC)                 # (F_in, H*C)
    att_src1 = glorot(k2, (H, C), C, 1)
    att_dst1 = glorot(k3, (H, C), C, 1)
    # Block-diagonal packing: a[h*C + c, h] = att[h, c]  ->  one matmul = all head scores.
    eye_h = jnp.eye(H, dtype=jnp.float32)
    a_src1 = (eye_h[:, None, :] * att_src1[:, :, None]).reshape(HC, H)
    a_dst1 = (eye_h[:, None, :] * att_dst1[:, :, None]).reshape(HC, H)
    a1 = jnp.concatenate([a_src1, a_dst1], axis=1)            # (H*C, 2H)
    b1 = jnp.zeros((1, HC), jnp.float32)

    # Layer 2 parameters pre-padded to lane-dense width OP (zero padding).
    w2 = glorot(k4, (HC, out_dim), HC, out_dim)               # (H*C, O)
    w2p = jnp.zeros((HC, OP), jnp.float32).at[:, :out_dim].set(w2)
    att_src2 = glorot(k5, (out_dim, 1), out_dim, 1)
    att_dst2 = glorot(k6, (out_dim, 1), out_dim, 1)
    a2 = jnp.concatenate([att_src2, att_dst2], axis=1)        # (O, 2)
    a2p = jnp.zeros((OP, 2), jnp.float32).at[:out_dim, :].set(a2)
    b2p = jnp.zeros((1, OP), jnp.float32)

    return {"w1": w1, "a1": a1, "b1": b1, "w2": w2p, "a2": a2p, "b2": b2p}


# ----------------------------------------------------------------------------
# Pure-JAX edge-wise reference (message passing with segment ops)
# ----------------------------------------------------------------------------
def gat_forward_ref(x, edge_index, params, num_heads, out_dim):
    N = x.shape[0]
    src, dst = edge_index[0], edge_index[1]
    loops = jnp.arange(N, dtype=edge_index.dtype)             # self-loops
    src = jnp.concatenate([src, loops])
    dst = jnp.concatenate([dst, loops])

    def conv(h, w, a, bias, heads, concat):
        xp = jnp.dot(h, w)                                    # (N, heads*C)
        C = xp.shape[1] // heads
        s = jnp.dot(xp, a)                                    # (N, 2*heads)
        s_src, s_dst = s[:, :heads], s[:, heads:]
        e = s_src[src] + s_dst[dst]                           # (E, heads)
        e = jnp.where(e > 0.0, e, 0.2 * e)                    # LeakyReLU(0.2)
        e_max = jax.ops.segment_max(e, dst, num_segments=N)
        p = jnp.exp(e - e_max[dst])
        denom = jax.ops.segment_sum(p, dst, num_segments=N)
        alpha = p / denom[dst]
        msg = xp.reshape(N, heads, C)[src] * alpha[..., None]
        out = jax.ops.segment_sum(msg, dst, num_segments=N)   # (N, heads, C)
        out = out.reshape(N, heads * C) if concat else jnp.mean(out, axis=1)
        return out + bias

    # Slice the kernel-layout (lane-padded) layer-2 params back to logical shapes.
    w2 = params["w2"][:, :out_dim]
    a2 = params["a2"][:out_dim, :]
    b2 = params["b2"][:, :out_dim]

    h1 = conv(x, params["w1"], params["a1"], params["b1"], num_heads, True)
    h1 = jnp.where(h1 > 0.0, h1, jnp.exp(h1) - 1.0)           # ELU
    return conv(h1, w2, a2, b2, 1, False)


# ----------------------------------------------------------------------------
if __name__ == "__main__":
    # Model config: INPUT_DIM=16, HIDDEN_DIM=32, NUM_HEADS=4 (H*C = 128), OUTPUT_DIM=8.
    IN_DIM, HIDDEN_DIM, OUT_DIM, NUM_HEADS = 16, 32, 8, 4
    N = 32                                                    # number of graph nodes

    key = jax.random.PRNGKey(0)
    key, k_x, k_p = jax.random.split(key, 3)

    # Deterministic directed graph: i->i+1, i->i+7, i+1->i (mod N). 96 distinct
    # edges, no pre-existing self-loops, no duplicates.
    nodes = jnp.arange(N, dtype=jnp.int32)
    src = jnp.concatenate([nodes, nodes, (nodes + 1) % N])
    dst = jnp.concatenate([(nodes + 1) % N, (nodes + 7) % N, nodes])
    edge_index = jnp.stack([src, dst])                        # (2, 96)

    x = jax.random.normal(k_x, (N, IN_DIM), jnp.float32)
    params = init_params(k_p, IN_DIM, HIDDEN_DIM, OUT_DIM, NUM_HEADS)

    out = gat_forward(x, edge_index, params, out_dim=OUT_DIM)
    out = jax.block_until_ready(out)

    ref = gat_forward_ref(x, edge_index, params, NUM_HEADS, OUT_DIM)
    assert out.shape == (N, OUT_DIM), out.shape
    # Tolerance accounts for bf16 MXU aggregation operands + approx EUP reciprocal.
    err = float(jnp.max(jnp.abs(out - ref)))
    assert err < 5e-2, err

    print("KERNEL_OK")
</pallas_src>

<mosaic_0001>
module attributes {stable_mosaic.version = 11 : i64} {
  func.func @_gat_kernel(%arg0: memref<32x16xf32, #tpu.memory_space<vmem>>, %arg1: memref<32x32xbf16, #tpu.memory_space<vmem>>, %arg2: memref<16x128xf32, #tpu.memory_space<vmem>>, %arg3: memref<128x8xf32, #tpu.memory_space<vmem>>, %arg4: memref<1x128xf32, #tpu.memory_space<vmem>>, %arg5: memref<128x128xf32, #tpu.memory_space<vmem>>, %arg6: memref<128x2xf32, #tpu.memory_space<vmem>>, %arg7: memref<1x128xf32, #tpu.memory_space<vmem>>, %arg8: memref<32x128xf32, #tpu.memory_space<vmem>>, %arg9: memref<32x128xf32, #tpu.memory_space<vmem>>) attributes {dimension_semantics = [], scalar_prefetch = 0 : i64, scratch_operands = 1 : i64, tpu.core_type = #tpu.core_type<tc>} {
    %c0 = arith.constant 0 : index
    %c0_0 = arith.constant 0 : index
    %0 = vector.load %arg1[%c0, %c0_0] : memref<32x32xbf16, #tpu.memory_space<vmem>>, vector<32x32xbf16>
    %1 = arith.extf %0 : vector<32x32xbf16> to vector<32x32xf32>
    %cst = arith.constant 0.000000e+00 : f32
    %2 = vector.broadcast %cst : f32 to vector<32x32xf32>
    %3 = arith.cmpf ogt, %1, %2 : vector<32x32xf32>
    %cst_1 = arith.constant 0.000000e+00 : f32
    %cst_2 = arith.constant -1.000000e+30 : f32
    %4 = vector.broadcast %cst_1 : f32 to vector<32x32xf32>
    %5 = vector.broadcast %cst_2 : f32 to vector<32x32xf32>
    %6 = arith.select %3, %4, %5 : vector<32x32xi1>, vector<32x32xf32>
    %c0_3 = arith.constant 0 : index
    %c0_4 = arith.constant 0 : index
    %7 = vector.load %arg0[%c0_3, %c0_4] : memref<32x16xf32, #tpu.memory_space<vmem>>, vector<32x16xf32>
    %c0_5 = arith.constant 0 : index
    %c0_6 = arith.constant 0 : index
    %8 = vector.load %arg2[%c0_5, %c0_6] : memref<16x128xf32, #tpu.memory_space<vmem>>, vector<16x128xf32>
    %cst_7 = arith.constant dense<0.000000e+00> : vector<32x128xf32>
    %9 = tpu.matmul %7, %8, %cst_7 {dimension_numbers = #tpu.dot_dimension_numbers<[1], [0], [0], [1], [0, 0, 1, 1], [], []>} : vector<32x16xf32>, vector<16x128xf32>, vector<32x128xf32> -> vector<32x128xf32>
    %c0_8 = arith.constant 0 : index
    %c0_9 = arith.constant 0 : index
    %10 = vector.load %arg3[%c0_8, %c0_9] : memref<128x8xf32, #tpu.memory_space<vmem>>, vector<128x8xf32>
    %cst_10 = arith.constant dense<0.000000e+00> : vector<32x8xf32>
    %11 = tpu.matmul %9, %10, %cst_10 {dimension_numbers = #tpu.dot_dimension_numbers<[1], [0], [0], [1], [0, 0, 1, 1], [], []>} : vector<32x128xf32>, vector<128x8xf32>, vector<32x8xf32> -> vector<32x8xf32>
    %12 = tpu.transpose %11, [1, 0] : vector<32x8xf32> -> vector<8x32xf32>
    %13 = vector.extract_strided_slice %12 {offsets = [0, 0], sizes = [1, 32], strides = [1, 1]} : vector<8x32xf32> to vector<1x32xf32>
    %14 = vector.extract_strided_slice %11 {offsets = [0, 4], sizes = [32, 1], strides = [1, 1]} : vector<32x8xf32> to vector<32x1xf32>
    %15 = vector.broadcast %14 : vector<32x1xf32> to vector<32x32xf32>
    %16 = vector.broadcast %13 : vector<1x32xf32> to vector<32x32xf32>
    %17 = arith.addf %15, %16 : vector<32x32xf32>
    %cst_11 = arith.constant 0.000000e+00 : f32
    %18 = vector.broadcast %cst_11 : f32 to vector<32x32xf32>
    %19 = arith.cmpf ogt, %17, %18 : vector<32x32xf32>
    %cst_12 = arith.constant 2.000000e-01 : f32
    %20 = vector.broadcast %cst_12 : f32 to vector<32x32xf32>
    %21 = arith.mulf %20, %17 : vector<32x32xf32>
    %22 = arith.select %19, %17, %21 : vector<32x32xi1>, vector<32x32xf32>
    %23 = arith.addf %22, %6 : vector<32x32xf32>
    %cst_13 = arith.constant dense<0xFF800000> : vector<32xf32>
    %24 = vector.multi_reduction <maximumf>, %23, %cst_13 [1] : vector<32x32xf32> to vector<32xf32>
    %25 = vector.shape_cast %24 : vector<32xf32> to vector<32x1xf32>
    %26 = vector.broadcast %25 : vector<32x1xf32> to vector<32x32xf32>
    %27 = arith.subf %23, %26 : vector<32x32xf32>
    %28 = math.exp %27 : vector<32x32xf32>
    %cst_14 = arith.constant dense<0.000000e+00> : vector<32xf32>
    %29 = vector.multi_reduction <add>, %28, %cst_14 [1] : vector<32x32xf32> to vector<32xf32>
    %30 = vector.shape_cast %29 : vector<32xf32> to vector<32x1xf32>
    %31 = tpu.reciprocal %30 {approx = true} : vector<32x1xf32> -> vector<32x1xf32>
    %32 = vector.broadcast %31 : vector<32x1xf32> to vector<32x32xf32>
    %33 = arith.mulf %28, %32 : vector<32x32xf32>
    %34 = arith.truncf %33 : vector<32x32xf32> to vector<32x32xbf16>
    %35 = vector.extract_strided_slice %9 {offsets = [0, 0], sizes = [32, 32], strides = [1, 1]} : vector<32x128xf32> to vector<32x32xf32>
    %36 = arith.truncf %35 : vector<32x32xf32> to vector<32x32xbf16>
    %cst_15 = arith.constant dense<0.000000e+00> : vector<32x32xf32>
    %37 = tpu.matmul %34, %36, %cst_15 {dimension_numbers = #tpu.dot_dimension_numbers<[1], [0], [0], [1], [0, 0, 1, 1], [], []>} : vector<32x32xbf16>, vector<32x32xbf16>, vector<32x32xf32> -> vector<32x32xf32>
    %c0_16 = arith.constant 0 : index
    %c0_17 = arith.constant 0 : index
    %38 = vector.load %arg9[%c0_16, %c0_17] : memref<32x128xf32, #tpu.memory_space<vmem>>, vector<32x32xf32>
    tpu.vector_store %arg9[%c0_16, %c0_17], %37 {strides = array<i32>} : memref<32x128xf32, #tpu.memory_space<vmem>>, vector<32x32xf32>,
    %39 = vector.extract_strided_slice %12 {offsets = [1, 0], sizes = [1, 32], strides = [1, 1]} : vector<8x32xf32> to vector<1x32xf32>
    %40 = vector.extract_strided_slice %11 {offsets = [0, 5], sizes = [32, 1], strides = [1, 1]} : vector<32x8xf32> to vector<32x1xf32>
    %41 = vector.broadcast %40 : vector<32x1xf32> to vector<32x32xf32>
    %42 = vector.broadcast %39 : vector<1x32xf32> to vector<32x32xf32>
    %43 = arith.addf %41, %42 : vector<32x32xf32>
    %cst_18 = arith.constant 0.000000e+00 : f32
    %44 = vector.broadcast %cst_18 : f32 to vector<32x32xf32>
    %45 = arith.cmpf ogt, %43, %44 : vector<32x32xf32>
    %cst_19 = arith.constant 2.000000e-01 : f32
    %46 = vector.broadcast %cst_19 : f32 to vector<32x32xf32>
    %47 = arith.mulf %46, %43 : vector<32x32xf32>
    %48 = arith.select %45, %43, %47 : vector<32x32xi1>, vector<32x32xf32>
    %49 = arith.addf %48, %6 : vector<32x32xf32>
    %cst_20 = arith.constant dense<0xFF800000> : vector<32xf32>
    %50 = vector.multi_reduction <maximumf>, %49, %cst_20 [1] : vector<32x32xf32> to vector<32xf32>
    %51 = vector.shape_cast %50 : vector<32xf32> to vector<32x1xf32>
    %52 = vector.broadcast %51 : vector<32x1xf32> to vector<32x32xf32>
    %53 = arith.subf %49, %52 : vector<32x32xf32>
    %54 = math.exp %53 : vector<32x32xf32>
    %cst_21 = arith.constant dense<0.000000e+00> : vector<32xf32>
    %55 = vector.multi_reduction <add>, %54, %cst_21 [1] : vector<32x32xf32> to vector<32xf32>
    %56 = vector.shape_cast %55 : vector<32xf32> to vector<32x1xf32>
    %57 = tpu.reciprocal %56 {approx = true} : vector<32x1xf32> -> vector<32x1xf32>
    %58 = vector.broadcast %57 : vector<32x1xf32> to vector<32x32xf32>
    %59 = arith.mulf %54, %58 : vector<32x32xf32>
    %60 = arith.truncf %59 : vector<32x32xf32> to vector<32x32xbf16>
    %61 = vector.extract_strided_slice %9 {offsets = [0, 32], sizes = [32, 32], strides = [1, 1]} : vector<32x128xf32> to vector<32x32xf32>
    %62 = arith.truncf %61 : vector<32x32xf32> to vector<32x32xbf16>
    %cst_22 = arith.constant dense<0.000000e+00> : vector<32x32xf32>
    %63 = tpu.matmul %60, %62, %cst_22 {dimension_numbers = #tpu.dot_dimension_numbers<[1], [0], [0], [1], [0, 0, 1, 1], [], []>} : vector<32x32xbf16>, vector<32x32xbf16>, vector<32x32xf32> -> vector<32x32xf32>
    %c0_23 = arith.constant 0 : index
    %c32 = arith.constant 32 : index
    %64 = vector.load %arg9[%c0_23, %c32] : memref<32x128xf32, #tpu.memory_space<vmem>>, vector<32x32xf32>
    tpu.vector_store %arg9[%c0_23, %c32], %63 {strides = array<i32>} : memref<32x128xf32, #tpu.memory_space<vmem>>, vector<32x32xf32>,
    %65 = vector.extract_strided_slice %12 {offsets = [2, 0], sizes = [1, 32], strides = [1, 1]} : vector<8x32xf32> to vector<1x32xf32>
    %66 = vector.extract_strided_slice %11 {offsets = [0, 6], sizes = [32, 1], strides = [1, 1]} : vector<32x8xf32> to vector<32x1xf32>
    %67 = vector.broadcast %66 : vector<32x1xf32> to vector<32x32xf32>
    %68 = vector.broadcast %65 : vector<1x32xf32> to vector<32x32xf32>
    %69 = arith.addf %67, %68 : vector<32x32xf32>
    %cst_24 = arith.constant 0.000000e+00 : f32
    %70 = vector.broadcast %cst_24 : f32 to vector<32x32xf32>
    %71 = arith.cmpf ogt, %69, %70 : vector<32x32xf32>
    %cst_25 = arith.constant 2.000000e-01 : f32
    %72 = vector.broadcast %cst_25 : f32 to vector<32x32xf32>
    %73 = arith.mulf %72, %69 : vector<32x32xf32>
    %74 = arith.select %71, %69, %73 : vector<32x32xi1>, vector<32x32xf32>
    %75 = arith.addf %74, %6 : vector<32x32xf32>
    %cst_26 = arith.constant dense<0xFF800000> : vector<32xf32>
    %76 = vector.multi_reduction <maximumf>, %75, %cst_26 [1] : vector<32x32xf32> to vector<32xf32>
    %77 = vector.shape_cast %76 : vector<32xf32> to vector<32x1xf32>
    %78 = vector.broadcast %77 : vector<32x1xf32> to vector<32x32xf32>
    %79 = arith.subf %75, %78 : vector<32x32xf32>
    %80 = math.exp %79 : vector<32x32xf32>
    %cst_27 = arith.constant dense<0.000000e+00> : vector<32xf32>
    %81 = vector.multi_reduction <add>, %80, %cst_27 [1] : vector<32x32xf32> to vector<32xf32>
    %82 = vector.shape_cast %81 : vector<32xf32> to vector<32x1xf32>
    %83 = tpu.reciprocal %82 {approx = true} : vector<32x1xf32> -> vector<32x1xf32>
    %84 = vector.broadcast %83 : vector<32x1xf32> to vector<32x32xf32>
    %85 = arith.mulf %80, %84 : vector<32x32xf32>
    %86 = arith.truncf %85 : vector<32x32xf32> to vector<32x32xbf16>
    %87 = vector.extract_strided_slice %9 {offsets = [0, 64], sizes = [32, 32], strides = [1, 1]} : vector<32x128xf32> to vector<32x32xf32>
    %88 = arith.truncf %87 : vector<32x32xf32> to vector<32x32xbf16>
    %cst_28 = arith.constant dense<0.000000e+00> : vector<32x32xf32>
    %89 = tpu.matmul %86, %88, %cst_28 {dimension_numbers = #tpu.dot_dimension_numbers<[1], [0], [0], [1], [0, 0, 1, 1], [], []>} : vector<32x32xbf16>, vector<32x32xbf16>, vector<32x32xf32> -> vector<32x32xf32>
    %c0_29 = arith.constant 0 : index
    %c64 = arith.constant 64 : index
    %90 = vector.load %arg9[%c0_29, %c64] : memref<32x128xf32, #tpu.memory_space<vmem>>, vector<32x32xf32>
    tpu.vector_store %arg9[%c0_29, %c64], %89 {strides = array<i32>} : memref<32x128xf32, #tpu.memory_space<vmem>>, vector<32x32xf32>,
    %91 = vector.extract_strided_slice %12 {offsets = [3, 0], sizes = [1, 32], strides = [1, 1]} : vector<8x32xf32> to vector<1x32xf32>
    %92 = vector.extract_strided_slice %11 {offsets = [0, 7], sizes = [32, 1], strides = [1, 1]} : vector<32x8xf32> to vector<32x1xf32>
    %93 = vector.broadcast %92 : vector<32x1xf32> to vector<32x32xf32>
    %94 = vector.broadcast %91 : vector<1x32xf32> to vector<32x32xf32>
    %95 = arith.addf %93, %94 : vector<32x32xf32>
    %cst_30 = arith.constant 0.000000e+00 : f32
    %96 = vector.broadcast %cst_30 : f32 to vector<32x32xf32>
    %97 = arith.cmpf ogt, %95, %96 : vector<32x32xf32>
    %cst_31 = arith.constant 2.000000e-01 : f32
    %98 = vector.broadcast %cst_31 : f32 to vector<32x32xf32>
    %99 = arith.mulf %98, %95 : vector<32x32xf32>
    %100 = arith.select %97, %95, %99 : vector<32x32xi1>, vector<32x32xf32>
    %101 = arith.addf %100, %6 : vector<32x32xf32>
    %cst_32 = arith.constant dense<0xFF800000> : vector<32xf32>
    %102 = vector.multi_reduction <maximumf>, %101, %cst_32 [1] : vector<32x32xf32> to vector<32xf32>
    %103 = vector.shape_cast %102 : vector<32xf32> to vector<32x1xf32>
    %104 = vector.broadcast %103 : vector<32x1xf32> to vector<32x32xf32>
    %105 = arith.subf %101, %104 : vector<32x32xf32>
    %106 = math.exp %105 : vector<32x32xf32>
    %cst_33 = arith.constant dense<0.000000e+00> : vector<32xf32>
    %107 = vector.multi_reduction <add>, %106, %cst_33 [1] : vector<32x32xf32> to vector<32xf32>
    %108 = vector.shape_cast %107 : vector<32xf32> to vector<32x1xf32>
    %109 = tpu.reciprocal %108 {approx = true} : vector<32x1xf32> -> vector<32x1xf32>
    %110 = vector.broadcast %109 : vector<32x1xf32> to vector<32x32xf32>
    %111 = arith.mulf %106, %110 : vector<32x32xf32>
    %112 = arith.truncf %111 : vector<32x32xf32> to vector<32x32xbf16>
    %113 = vector.extract_strided_slice %9 {offsets = [0, 96], sizes = [32, 32], strides = [1, 1]} : vector<32x128xf32> to vector<32x32xf32>
    %114 = arith.truncf %113 : vector<32x32xf32> to vector<32x32xbf16>
    %cst_34 = arith.constant dense<0.000000e+00> : vector<32x32xf32>
    %115 = tpu.matmul %112, %114, %cst_34 {dimension_numbers = #tpu.dot_dimension_numbers<[1], [0], [0], [1], [0, 0, 1, 1], [], []>} : vector<32x32xbf16>, vector<32x32xbf16>, vector<32x32xf32> -> vector<32x32xf32>
    %c0_35 = arith.constant 0 : index
    %c96 = arith.constant 96 : index
    %116 = vector.load %arg9[%c0_35, %c96] : memref<32x128xf32, #tpu.memory_space<vmem>>, vector<32x32xf32>
    tpu.vector_store %arg9[%c0_35, %c96], %115 {strides = array<i32>} : memref<32x128xf32, #tpu.memory_space<vmem>>, vector<32x32xf32>,
    %c0_36 = arith.constant 0 : index
    %c0_37 = arith.constant 0 : index
    %117 = vector.load %arg9[%c0_36, %c0_37] : memref<32x128xf32, #tpu.memory_space<vmem>>, vector<32x128xf32>
    %c0_38 = arith.constant 0 : index
    %c0_39 = arith.constant 0 : index
    %118 = vector.load %arg4[%c0_38, %c0_39] : memref<1x128xf32, #tpu.memory_space<vmem>>, vector<1x128xf32>
    %119 = vector.broadcast %118 : vector<1x128xf32> to vector<32x128xf32>
    %120 = arith.addf %117, %119 : vector<32x128xf32>
    %cst_40 = arith.constant 0.000000e+00 : f32
    %121 = vector.broadcast %cst_40 : f32 to vector<32x128xf32>
    %122 = arith.cmpf ogt, %120, %121 : vector<32x128xf32>
    %cst_41 = arith.constant 0.000000e+00 : f32
    %123 = vector.broadcast %cst_41 : f32 to vector<32x128xf32>
    %124 = arith.minimumf %120, %123 : vector<32x128xf32>
    %125 = math.exp %124 : vector<32x128xf32>
    %cst_42 = arith.constant 1.000000e+00 : f32
    %126 = vector.broadcast %cst_42 : f32 to vector<32x128xf32>
    %127 = arith.subf %125, %126 : vector<32x128xf32>
    %128 = arith.select %122, %120, %127 : vector<32x128xi1>, vector<32x128xf32>
    %c0_43 = arith.constant 0 : index
    %c0_44 = arith.constant 0 : index
    %129 = vector.load %arg5[%c0_43, %c0_44] : memref<128x128xf32, #tpu.memory_space<vmem>>, vector<128x128xf32>
    %cst_45 = arith.constant dense<0.000000e+00> : vector<32x128xf32>
    %130 = tpu.matmul %128, %129, %cst_45 {dimension_numbers = #tpu.dot_dimension_numbers<[1], [0], [0], [1], [0, 0, 1, 1], [], []>} : vector<32x128xf32>, vector<128x128xf32>, vector<32x128xf32> -> vector<32x128xf32>
    %c0_46 = arith.constant 0 : index
    %c0_47 = arith.constant 0 : index
    %131 = vector.load %arg6[%c0_46, %c0_47] : memref<128x2xf32, #tpu.memory_space<vmem>>, vector<128x2xf32>
    %cst_48 = arith.constant dense<0.000000e+00> : vector<32x2xf32>
    %132 = tpu.matmul %130, %131, %cst_48 {dimension_numbers = #tpu.dot_dimension_numbers<[1], [0], [0], [1], [0, 0, 1, 1], [], []>} : vector<32x128xf32>, vector<128x2xf32>, vector<32x2xf32> -> vector<32x2xf32>
    %133 = tpu.transpose %132, [1, 0] : vector<32x2xf32> -> vector<2x32xf32>
    %134 = vector.extract_strided_slice %133 {offsets = [0, 0], sizes = [1, 32], strides = [1, 1]} : vector<2x32xf32> to vector<1x32xf32>
    %135 = vector.extract_strided_slice %132 {offsets = [0, 1], sizes = [32, 1], strides = [1, 1]} : vector<32x2xf32> to vector<32x1xf32>
    %136 = vector.broadcast %135 : vector<32x1xf32> to vector<32x32xf32>
    %137 = vector.broadcast %134 : vector<1x32xf32> to vector<32x32xf32>
    %138 = arith.addf %136, %137 : vector<32x32xf32>
    %cst_49 = arith.constant 0.000000e+00 : f32
    %139 = vector.broadcast %cst_49 : f32 to vector<32x32xf32>
    %140 = arith.cmpf ogt, %138, %139 : vector<32x32xf32>
    %cst_50 = arith.constant 2.000000e-01 : f32
    %141 = vector.broadcast %cst_50 : f32 to vector<32x32xf32>
    %142 = arith.mulf %141, %138 : vector<32x32xf32>
    %143 = arith.select %140, %138, %142 : vector<32x32xi1>, vector<32x32xf32>
    %144 = arith.addf %143, %6 : vector<32x32xf32>
    %cst_51 = arith.constant dense<0xFF800000> : vector<32xf32>
    %145 = vector.multi_reduction <maximumf>, %144, %cst_51 [1] : vector<32x32xf32> to vector<32xf32>
    %146 = vector.shape_cast %145 : vector<32xf32> to vector<32x1xf32>
    %147 = vector.broadcast %146 : vector<32x1xf32> to vector<32x32xf32>
    %148 = arith.subf %144, %147 : vector<32x32xf32>
    %149 = math.exp %148 : vector<32x32xf32>
    %cst_52 = arith.constant dense<0.000000e+00> : vector<32xf32>
    %150 = vector.multi_reduction <add>, %149, %cst_52 [1] : vector<32x32xf32> to vector<32xf32>
    %151 = vector.shape_cast %150 : vector<32xf32> to vector<32x1xf32>
    %152 = tpu.reciprocal %151 {approx = true} : vector<32x1xf32> -> vector<32x1xf32>
    %153 = vector.broadcast %152 : vector<32x1xf32> to vector<32x32xf32>
    %154 = arith.mulf %149, %153 : vector<32x32xf32>
    %155 = arith.truncf %154 : vector<32x32xf32> to vector<32x32xbf16>
    %156 = arith.truncf %130 : vector<32x128xf32> to vector<32x128xbf16>
    %cst_53 = arith.constant dense<0.000000e+00> : vector<32x128xf32>
    %157 = tpu.matmul %155, %156, %cst_53 {dimension_numbers = #tpu.dot_dimension_numbers<[1], [0], [0], [1], [0, 0, 1, 1], [], []>} : vector<32x32xbf16>, vector<32x128xbf16>, vector<32x128xf32> -> vector<32x128xf32>
    %c0_54 = arith.constant 0 : index
    %c0_55 = arith.constant 0 : index
    %158 = vector.load %arg7[%c0_54, %c0_55] : memref<1x128xf32, #tpu.memory_space<vmem>>, vector<1x128xf32>
    %159 = vector.broadcast %158 : vector<1x128xf32> to vector<32x128xf32>
    %160 = arith.addf %157, %159 : vector<32x128xf32>
    %c0_56 = arith.constant 0 : index
    %c0_57 = arith.constant 0 : index
    %161 = vector.load %arg8[%c0_56, %c0_57] : memref<32x128xf32, #tpu.memory_space<vmem>>, vector<32x128xf32>
    tpu.vector_store %arg8[%c0_56, %c0_57], %160 {strides = array<i32>} : memref<32x128xf32, #tpu.memory_space<vmem>>, vector<32x128xf32>,
    return
  }
}

</mosaic_0001>

<bundles_post_ra>
// kernel: gat_forward.1
= control target key start
LH: loop header
LB: loop body
LE: loop exit
PB: predicated region body
PF: predicated region fallthrough
CT: control target
= control target key end

     0   :  { %vm52_vm0 = vcmask 130048   ;;  %v1145_v22 = vmov 7   ;;  %v1146_v23 = vmov 4   ;;  %s1147_s24 = smov 96   ;;  %v1148_v30 = vmov 6   ;;  %s1152_s28 = smov 64   ;;  %s1694_s2 = inlined_call_operand.vmem [shape: f32[16,128], index: 2, kind: input, shape index: {}]   ;;  %s1695_s0 = inlined_call_operand.vmem [shape: f32[32,16], index: 0, kind: input, shape index: {}]   ;;  %s1696_s3 = inlined_call_operand.vmem [shape: f32[128,8], index: 3, kind: input, shape index: {}]   ;;  %s1697_s1 = inlined_call_operand.vmem [shape: bf16[32,32], index: 1, kind: input, shape index: {}]   ;;  %s1698_s4 = inlined_call_operand.vmem [shape: f32[1,128], index: 4, kind: input, shape index: {}]   ;;  %s1699_s5 = inlined_call_operand.vmem [shape: f32[128,128], index: 5, kind: input, shape index: {}]   ;;  %s1700_s6 = inlined_call_operand.vmem [shape: f32[128,2], index: 6, kind: input, shape index: {}]   ;;  %s1701_s7 = inlined_call_operand.vmem [shape: f32[1,128], index: 7, kind: input, shape index: {}]   ;;  %s1702_s8 = inlined_call_operand.vmem [shape: f32[32,128], index: 8, kind: output, shape index: {}]  }
   0x1   :  { %v51_v0 = vld [vmem:[%s1694_s2 + $0x8] sm:$0xff]  ;;  %v50_v1 = vld [vmem:[%s1694_s2] sm:$0xff]  ;;  %v48_v3 = vld [vmem:[%s1695_s0 + $0x10] sm:$0xff]  ;;  %1038 = vset.pattern.permute.xlu1 %v1145_v22  ;;  %1036 = vset.pattern.permute.xlu0 %v1146_v23  ;;  %v1149_v33 = vmov 5   ;;  %v1150_v60 = vmov -1e+30  }
   0x2   :  { %79 = vmatpush.msra.mxu0 %v51_v0  ;;  %1008 = vmatpush.msra.mxu2 %v51_v0  ;;  %v46_v2 = vld [vmem:[%s1695_s0] sm:$0xff]  ;;  %v109_v4 = vld [vmem:[%s1696_s3 + $0x78] sm:$0xff]  ;;  %v108_v5 = vld [vmem:[%s1696_s3 + $0x70] sm:$0xff]  ;;  %vm212_vm2 = vcmask 261120  }
   0x3   :  { %110 = vmatpush.msra.mxu1 %v109_v4  ;;  %v107_v6 = vld [vmem:[%s1696_s3 + $0x68] sm:$0xff]  ;;  %v106_v7 = vld [vmem:[%s1696_s3 + $0x60] sm:$0xff]  ;;  %v49_v9 = vld [vmem:[%s1695_s0 + $0x18] sm:$0xff]  ;;  %1043 = vset.pattern.permute.xlu2 %v1148_v30 }
   0x4   :  { %80 = vmatpush.msra.mxu0 %v50_v1  ;;  %1009 = vmatpush.msra.mxu2 %v50_v1  ;;  %v47_v8 = vld [vmem:[%s1695_s0 + $0x8] sm:$0xff]  ;;  %v105_v10 = vld [vmem:[%s1696_s3 + $0x58] sm:$0xff]  ;;  %v104_v11 = vld [vmem:[%s1696_s3 + $0x50] sm:$0xff] }
   0x5   :  { %981 = vmatmul.msk.f32.vlgmr.msra.gmra.mxu0 %vm52_vm0, %v46_v2  ;;  %983 = vmatmul.msk.f32.vlgmr.msra.gmra.mxu2 %vm52_vm0, %v48_v3  ;;  %v103_v12 = vld [vmem:[%s1696_s3 + $0x48] sm:$0xff]  ;;  %v102_v13 = vld [vmem:[%s1696_s3 + $0x40] sm:$0xff]  ;;  %v101_v14 = vld [vmem:[%s1696_s3 + $0x38] sm:$0xff] }
   0x6   :  { %111 = vmatpush.msra.mxu1 %v108_v5  ;;  %v100_v15 = vld [vmem:[%s1696_s3 + $0x30] sm:$0xff]  ;;  %v99_v16 = vld [vmem:[%s1696_s3 + $0x28] sm:$0xff]  ;;  %v98_v17 = vld [vmem:[%s1696_s3 + $0x20] sm:$0xff] }
   0x7   :  { %v97_v18 = vld [vmem:[%s1696_s3 + $0x18] sm:$0xff]  ;;  %v96_v19 = vld [vmem:[%s1696_s3 + $0x10] sm:$0xff]  ;;  %v95_v20 = vld [vmem:[%s1696_s3 + $0x8] sm:$0xff] }
   0x8   :  { %112 = vmatpush.msra.mxu1 %v107_v6  ;;  %v94_v21 = vld [vmem:[%s1696_s3] sm:$0xff]  ;;  %v1007_v4 = vld [vmem:[%s1697_s1 + $0x8] sm:$0xff]  }
   0x9   :  { %v1000_v46 = vld [vmem:[%s1697_s1] sm:$0xff]   ;;  %s1151_s1 = smov 32  }
   0xa   :  { %113 = vmatpush.msra.mxu1 %v106_v7  ;;  %v1001_v47 = vunpack.c.l.bf16 %v1000_v46  ;;  %v1002_v55 = vunpack.c.h.bf16 %v1000_v46 }
   0xc   :  { %114 = vmatpush.msra.mxu1 %v105_v10  ;;  %vm38_vm1 = vcmp.gt.f32.partialorder %v1001_v47, 0.0  ;;  %vm1305_vm7 = vcmp.gt.f32.partialorder %v1002_v55, 0.0 }
   0xd   :  { %982 = vmatmul.msk.f32.gmra.mxu0 %vm52_vm0, %v47_v8  ;;  %984 = vmatmul.msk.f32.gmra.mxu2 %vm52_vm0, %v49_v9  ;;  %v1301_v61 = vsel %vm38_vm1, 0.0, %v1150_v60 }
   0xe   :  { %115 = vmatpush.msra.mxu1 %v104_v11 }
  0x10   :  { %116 = vmatpush.msra.mxu1 %v103_v12 }
  0x12   :  { %117 = vmatpush.msra.mxu1 %v102_v13  ;;  %v1006_v13 = vunpack.c.h.bf16 %v1007_v4 }
  0x14   :  { %118 = vmatpush.msra.mxu1 %v101_v14  ;;  %vm41_vm10 = vcmp.gt.f32.partialorder %v1006_v13, 0.0 }
  0x16   :  { %119 = vmatpush.msra.mxu1 %v100_v15 }
  0x18   :  { %120 = vmatpush.msra.mxu1 %v99_v16 }
  0x1a   :  { %121 = vmatpush.msra.mxu1 %v98_v17 }
  0x1c   :  { %122 = vmatpush.msra.mxu1 %v97_v18 }
  0x1e   :  { %123 = vmatpush.msra.mxu1 %v96_v19 }
  0x20   :  { %124 = vmatpush.msra.mxu1 %v95_v20 }
  0x22   :  { %125 = vmatpush.msra.mxu1 %v94_v21  ;;  %v1332_v21 = vsel %vm1305_vm7, 0.0, %v1150_v60  ;;  %vm422_vm7 = vcmask 523520  }
  0x82   :  { %v82_v24 = vpop.f32.mrf.mxu0 }
  0x83   :  { %126 = vmatmul.f32.vlgmr.msra.gmra.mxu1 %v82_v24 }
  0x88   :  { %v88_v25 = vpop.f32.mrf.mxu2 }
  0x8a   :  { %v85_v26 = vpop.f32.mrf.mxu0 }
  0x8b   :  { %129 = vmatmul.f32.gmra.mxu1 %v85_v26  ;;  %v1274_v29 = vpack.c.bf16 %v85_v26, %v82_v24 }
  0x90   :  { %v91_v27 = vpop.f32.mrf.mxu2 }
  0x91   :  { %v1269_v28 = vpack.c.bf16 %v91_v27, %v88_v25 }
  0x93   :  { %273 = vmatpush.bf16.msrb.mxu2 %v1269_v28  ;;  %132 = vmatmul.f32.gmra.mxu1 %v88_v25 }
  0x94   :  { %377 = vrot.lane.b32.xlu0 %v1269_v28, %s1147_s24 }
  0x97   :  { %274 = vmatpush.bf16.msrb.mxu2 %v1274_v29 }
  0x9b   :  { %135 = vmatmul.f32.gmra.mxu1 %v91_v27 }
 0x100   :  { %v127_v31 = vpop.f32.mrf.mxu1 }
 0x101   :  { %563 = vperm.xlu1 %1038, %v127_v31   ;;  %173 = vperm.xlu0 %1036, %v127_v31  }
 0x106   :  { %v378_v34 = vpop.permute.xlu0 %377 }
 0x107   :  { %393 = vmatpush.bf16.msra.mxu3 %v378_v34 }
 0x108   :  { %v130_v32 = vpop.f32.mrf.mxu1 }
 0x109   :  { %1039 = vset.pattern.permute.xlu1 %v1148_v30  ;;  %1037 = vset.pattern.permute.xlu0 %v1149_v33 }
 0x10a   :  { %432 = vperm.xlu2 %1043, %v130_v32   ;;  %428 = vperm.xlu1 %1039, %v127_v31  }
 0x10b   :  { %291 = vperm.xlu0 %1037, %v127_v31  }
 0x110   :  { %v133_v35 = vpop.f32.mrf.mxu1 }
 0x112   :  { %1041 = vset.pattern.permute.xlu1 %v1149_v33 }
 0x113   :  { %1040 = vset.pattern.permute.xlu0 %v1146_v23  ;;  %295 = vperm.xlu1 %1041, %v130_v32  }
 0x114   :  { %178 = vperm.xlu0 %1040, %v130_v32  }
 0x118   :  { %v136_v36 = vpop.f32.mrf.mxu1 }
 0x11b   :  { %1044 = vset.pattern.permute.xlu1 %v1146_v23 }
 0x11c   :  { %1042 = vset.pattern.permute.xlu0 %v1145_v22  ;;  %183 = vperm.xlu1 %1044, %v133_v35  }
 0x11d   :  { %567 = vperm.xlu0 %1042, %v130_v32  }
 0x124   :  { %1045 = vset.pattern.permute.xlu1 %v1149_v33 }
 0x125   :  { %299 = vperm.xlu1 %1045, %v133_v35   ;;  %1049 = vset.pattern.permute.xlu0 %v1149_v33 }
 0x126   :  { %303 = vperm.xlu0 %1049, %v136_v36  }
 0x12d   :  { %1046 = vset.pattern.permute.xlu1 %v1145_v22 }
 0x12e   :  { %571 = vperm.xlu1 %1046, %v133_v35   ;;  %1050 = vset.pattern.permute.xlu0 %v1145_v22 }
 0x12f   :  { %575 = vperm.xlu0 %1050, %v136_v36  }
 0x130   :  { %139 = vxpose.xlu2.b32.start [1/4] (short) (narrow) %v127_v31, 8 }
 0x136   :  { %1047 = vset.pattern.permute.xlu1 %v1148_v30 }
 0x137   :  { %436 = vperm.xlu1 %1047, %v133_v35  }
 0x138   :  { %140 = vxpose.xlu2.b32.cont [2/4] (short) (narrow) %v130_v32, 8 }
 0x13f   :  { %1048 = vset.pattern.permute.xlu1 %v1146_v23 }
 0x140   :  { %141 = vxpose.xlu2.b32.cont [3/4] (short) (narrow) %v133_v35, 8  ;;  %188 = vperm.xlu1 %1048, %v136_v36   ;;  %v1346_v35 = vsel %vm41_vm10, 0.0, %v1150_v60 }
 0x148   :  { %142 = vxpose.xlu2.b32.end [4/4] (short) (narrow) %v136_v36, 8  ;;  %1051 = vset.pattern.permute.xlu1 %v1148_v30 }
 0x149   :  { %440 = vperm.xlu1 %1051, %v136_v36  }
 0x164   :  { %v433_v44 = vpop.permute.xlu2 %432 }
 0x173   :  { %v564_v37 = vpop.permute.xlu1 %563  ;;  %v174_v41 = vpop.permute.xlu0 %173 }
 0x17c   :  { %v429_v38 = vpop.permute.xlu1 %428 }
 0x17d   :  { %v292_v43 = vpop.permute.xlu0 %291 }
 0x185   :  { %v296_v39 = vpop.permute.xlu1 %295 }
 0x186   :  { %v179_v48 = vpop.permute.xlu0 %178 }
 0x18e   :  { %v1277_v40 = vpop.permute.xlu1 %183 }
 0x18f   :  { %v568_v14 = vpop.permute.xlu0 %567 }
 0x197   :  { %v1279_v42 = vpop.permute.xlu1 %299 }
 0x198   :  { %v304_v36 = vpop.permute.xlu0 %303 }
 0x1a0   :  { %v1281_v45 = vpop.permute.xlu1 %571 }
 0x1a9   :  { %v1294_v54 = vpop.permute.xlu1 %436 }
 0x1b2   :  { %v189_v23 = vpop.permute.xlu1 %188 }
 0x1c9   :  { %v155_v49 = vpop.trf.xlu2 }
 0x1ca   :  { %v1286_v50 = vperm.slane %v155_v49, 0  ;;  %v1288_v51 = vperm.slane %v155_v49, 1  ;;  %v1290_v52 = vperm.slane %v155_v49, 2  ;;  %v1292_v53 = vperm.slane %v155_v49, 3 }
 0x1cc   :  { %v579_v56 = vadd.f32 %v1292_v53, %v564_v37  ;;  %v307_v57 = vadd.f32 %v1288_v51, %v292_v43  ;;  %v192_v58 = vadd.f32 %v1286_v50, %v174_v41  ;;  %v444_v59 = vadd.f32 %v1290_v52, %v429_v38 }
 0x1cd   :  { %v193_v62 = vadd.f32 %v1286_v50, %v179_v48  ;;  %v308_v63 = vadd.f32 %v1288_v51, %v296_v39  ;;  %v445_v18 = vadd.f32 %v1290_v52, %v433_v44  ;;  %v580_v25 = vadd.f32 %v1292_v53, %v568_v14 }
 0x1ce   :  { %vm583_vm3 = vcmp.gt.f32.partialorder %v579_v56, 0.0  ;;  %v587_v0 = vmul.f32 0.2, %v579_v56  ;;  %vm311_vm4 = vcmp.gt.f32.partialorder %v307_v57, 0.0  ;;  %v315_v1 = vmul.f32 0.2, %v307_v57 }
 0x1cf   :  { %vm196_vm5 = vcmp.gt.f32.partialorder %v192_v58, 0.0  ;;  %v200_v2 = vmul.f32 0.2, %v192_v58  ;;  %vm448_vm6 = vcmp.gt.f32.partialorder %v444_v59, 0.0  ;;  %v452_v7 = vmul.f32 0.2, %v444_v59 }
 0x1d0   :  { %v591_v5 = vsel %vm583_vm3, %v579_v56, %v587_v0  ;;  %v319_v6 = vsel %vm311_vm4, %v307_v57, %v315_v1  ;;  %v201_v8 = vmul.f32 0.2, %v193_v62  ;;  %vm197_vm8 = vcmp.gt.f32.partialorder %v193_v62, 0.0 }
 0x1d1   :  { %v1313_v9 = vadd.f32 %v591_v5, %v1301_v61  ;;  %v1316_v10 = vadd.f32 %v319_v6, %v1301_v61  ;;  %v204_v11 = vsel %vm196_vm5, %v192_v58, %v200_v2  ;;  %vm312_vm9 = vcmp.gt.f32.partialorder %v308_v63, 0.0 }
 0x1d2   :  { %v1319_v12 = vadd.f32 %v204_v11, %v1301_v61  ;;  %v316_v17 = vmul.f32 0.2, %v308_v63  ;;  %v456_v20 = vsel %vm448_vm6, %v444_v59, %v452_v7  ;;  %v205_v22 = vsel %vm197_vm8, %v193_v62, %v201_v8  ;;  %v441_v62 = vpop.permute.xlu1 %440 }
 0x1d3   :  { %v599_v15 = vsel %vm212_vm2, %v1313_v9, -inf  ;;  %v327_v16 = vsel %vm212_vm2, %v1316_v10, -inf  ;;  %v195_v26 = vadd.f32 %v1286_v50, %v189_v23  ;;  %v1337_v27 = vadd.f32 %v456_v20, %v1301_v61 }
 0x1d4   :  { %600 = vmax.xlane.f32.xlu2 %v599_v15  ;;  %328 = vmax.xlane.f32.xlu0 %v327_v16  ;;  %v213_v19 = vsel %vm212_vm2, %v1319_v12, -inf  ;;  %v320_v24 = vsel %vm312_vm9, %v308_v63, %v316_v17  ;;  %v1340_v30 = vadd.f32 %v205_v22, %v1332_v21  ;;  %v453_v31 = vmul.f32 0.2, %v445_v18  ;;  %v576_v22 = vpop.permute.xlu0 %575 }
 0x1d5   :  { %214 = vmax.xlane.f32.xlu1 %v213_v19  ;;  %v1343_v32 = vadd.f32 %v320_v24, %v1332_v21  ;;  %vm449_vm11 = vcmp.gt.f32.partialorder %v445_v18, 0.0  ;;  %v203_v33 = vmul.f32 0.2, %v195_v26  ;;  %v588_v34 = vmul.f32 0.2, %v580_v25 }
 0x1d6   :  { %vm199_vm12 = vcmp.gt.f32.partialorder %v195_v26, 0.0  ;;  %vm584_vm13 = vcmp.gt.f32.partialorder %v580_v25, 0.0  ;;  %v464_v37 = vsel %vm212_vm2, %v1337_v27, -inf  ;;  %v216_v38 = vsel %vm212_vm2, %v1340_v30, -inf }
 0x1d7   :  { %v457_v39 = vsel %vm449_vm11, %v445_v18, %v453_v31  ;;  %v1005_v41 = vunpack.c.l.bf16 %v1007_v4  ;;  %v330_v43 = vsel %vm212_vm2, %v1343_v32, -inf  ;;  %v207_v44 = vsel %vm199_vm12, %v195_v26, %v203_v33 }
 0x1d8   :  { %v581_v46 = vadd.f32 %v1292_v53, %v1281_v45  ;;  %v310_v47 = vadd.f32 %v1288_v51, %v304_v36  ;;  %v592_v48 = vsel %vm584_vm13, %v580_v25, %v588_v34  ;;  %v194_v49 = vadd.f32 %v1286_v50, %v1277_v40 }
 0x1d9   :  { %v1360_v55 = vadd.f32 %v457_v39, %v1332_v21  ;;  %v1363_v56 = vadd.f32 %v207_v44, %v1346_v35  ;;  %v1366_v57 = vadd.f32 %v592_v48, %v1332_v21  ;;  %vm40_vm14 = vcmp.gt.f32.partialorder %v1005_v41, 0.0 }
 0x1da   :  { %v589_v58 = vmul.f32 0.2, %v581_v46  ;;  %v318_v59 = vmul.f32 0.2, %v310_v47  ;;  %vm585_vm15 = vcmp.gt.f32.partialorder %v581_v46, 0.0  ;;  %vm314_vm0 = vcmp.gt.f32.partialorder %v310_v47, 0.0 }
 0x1db   :  { %v202_v45 = vmul.f32 0.2, %v194_v49  ;;  %vm198_vm1 = vcmp.gt.f32.partialorder %v194_v49, 0.0  ;;  %v467_v40 = vsel %vm212_vm2, %v1360_v55, -inf  ;;  %v222_v50 = vsel %vm212_vm2, %v1363_v56, -inf }
 0x1dc   :  { %465 = vmax.xlane.f32.xlu2 %v464_v37  ;;  %217 = vmax.xlane.f32.xlu0 %v216_v38  ;;  %v1373_v63 = vsel %vm40_vm14, 0.0, %v1150_v60  ;;  %v602_v0 = vsel %vm212_vm2, %v1366_v57, -inf  ;;  %v593_v1 = vsel %vm585_vm15, %v581_v46, %v589_v58  ;;  %v322_v2 = vsel %vm314_vm0, %v310_v47, %v318_v59 }
 0x1dd   :  { %331 = vmax.xlane.f32.xlu1 %v330_v43  ;;  %v447_v3 = vadd.f32 %v1290_v52, %v441_v62  ;;  %v206_v4 = vsel %vm198_vm1, %v194_v49, %v202_v45  ;;  %v309_v5 = vadd.f32 %v1288_v51, %v1279_v42  ;;  %v1381_v6 = vadd.f32 %v593_v1, %v1373_v63 }
 0x1de   :  { %v1384_v60 = vadd.f32 %v322_v2, %v1346_v35  ;;  %v1387_v7 = vadd.f32 %v206_v4, %v1373_v63  ;;  %v446_v16 = vadd.f32 %v1290_v52, %v1294_v54  ;;  %v582_v52 = vadd.f32 %v1292_v53, %v576_v22 }
 0x1df   :  { %v455_v8 = vmul.f32 0.2, %v447_v3  ;;  %v317_v11 = vmul.f32 0.2, %v309_v5  ;;  %vm451_vm3 = vcmp.gt.f32.partialorder %v447_v3, 0.0  ;;  %vm313_vm4 = vcmp.gt.f32.partialorder %v309_v5, 0.0 }
 0x1e0   :  { %v605_v13 = vsel %vm212_vm2, %v1381_v6, -inf  ;;  %v336_v14 = vsel %vm212_vm2, %v1384_v60, -inf  ;;  %v219_v42 = vsel %vm212_vm2, %v1387_v7, -inf  ;;  %v454_v19 = vmul.f32 0.2, %v446_v16 }
 0x1e1   :  { %v459_v51 = vsel %vm451_vm3, %v447_v3, %v455_v8  ;;  %v321_v15 = vsel %vm313_vm4, %v309_v5, %v317_v11  ;;  %vm450_vm5 = vcmp.gt.f32.partialorder %v446_v16, 0.0  ;;  %v590_v25 = vmul.f32 0.2, %v582_v52 }
 0x1e2   :  { %v1398_v17 = vadd.f32 %v459_v51, %v1346_v35  ;;  %v1401_v18 = vadd.f32 %v321_v15, %v1373_v63  ;;  %v458_v24 = vsel %vm450_vm5, %v446_v16, %v454_v19  ;;  %vm586_vm6 = vcmp.gt.f32.partialorder %v582_v52, 0.0 }
 0x1e3   :  { %v1409_v54 = vadd.f32 %v458_v24, %v1373_v63  ;;  %v594_v31 = vsel %vm586_vm6, %v582_v52, %v590_v25  ;;  %vm557_vm8 = vcmask 785920   ;;  %vm692_vm9 = vcmask 1048320  }
 0x1e4   :  { %468 = vmax.xlane.f32.xlu0 %v467_v40  ;;  %223 = vmax.xlane.f32.xlu2 %v222_v50  ;;  %v473_v20 = vsel %vm212_vm2, %v1398_v17, -inf  ;;  %v333_v23 = vsel %vm212_vm2, %v1401_v18, -inf  ;;  %v1414_v33 = vadd.f32 %v594_v31, %v1346_v35 }
 0x1e5   :  { %603 = vmax.xlane.f32.xlu1 %v602_v0  ;;  %v470_v26 = vsel %vm212_vm2, %v1409_v54, -inf }
 0x1e6   :  { %v608_v34 = vsel %vm212_vm2, %v1414_v33, -inf }
 0x1ec   :  { %606 = vmax.xlane.f32.xlu0 %v605_v13  ;;  %337 = vmax.xlane.f32.xlu2 %v336_v14 }
 0x1ed   :  { %220 = vmax.xlane.f32.xlu1 %v219_v42 }
 0x1f4   :  { %474 = vmax.xlane.f32.xlu2 %v473_v20 }
 0x1f5   :  { %334 = vmax.xlane.f32.xlu1 %v333_v23 }
 0x1fd   :  { %471 = vmax.xlane.f32.xlu1 %v470_v26 }
 0x205   :  { %609 = vmax.xlane.f32.xlu1 %v608_v34 }
 0x247   :  { %v601_v36 = vpop.xlane.xlu2 %600  ;;  %v329_v37 = vpop.xlane.xlu0 %328 }
 0x248   :  { %v611_v53 = vsub.f32 %v1313_v9, %v601_v36  ;;  %v215_v38 = vpop.xlane.xlu1 %214  ;;  %v339_v43 = vsub.f32 %v1316_v10, %v329_v37 }
 0x249   :  { %v225_v39 = vsub.f32 %v1319_v12, %v215_v38 }
 0x24a   :  { %v615_v41 = vmul.f32 1.442695, %v611_v53  ;;  %v343_v46 = vmul.f32 1.442695, %v339_v43 }
 0x24b   :  { %v229_v44 = vmul.f32 1.442695, %v225_v39 }
 0x24c   :  { %1057 = vpow2.f32 %v615_v41 }
 0x24d   :  { %1059 = vpow2.f32 %v229_v44 }
 0x24e   :  { %1061 = vpow2.f32 %v343_v46 }
 0x24f   :  { %v466_v47 = vpop.xlane.xlu2 %465  ;;  %v218_v48 = vpop.xlane.xlu0 %217 }
 0x250   :  { %v476_v49 = vsub.f32 %v1337_v27, %v466_v47  ;;  %v226_v58 = vsub.f32 %v1340_v30, %v218_v48  ;;  %v332_v59 = vpop.xlane.xlu1 %331 }
 0x251   :  { %v340_v12 = vsub.f32 %v1343_v32, %v332_v59 }
 0x252   :  { %v1423_v45 = vpop.eup %1057  ;;  %v480_v9 = vmul.f32 1.442695, %v476_v49  ;;  %v231_v62 = vmul.f32 1.442695, %v226_v58 }
 0x253   :  { %v623_v10 = vsel %vm212_vm2, %v1423_v45, 0.0  ;;  %v1428_v40 = vpop.eup %1059  ;;  %v345_v30 = vmul.f32 1.442695, %v340_v12 }
 0x254   :  { %1063 = vpow2.f32 %v480_v9  ;;  %624 = vadd.xlane.f32.xlu1 %v623_v10  ;;  %v237_v27 = vsel %vm212_vm2, %v1428_v40, 0.0  ;;  %v1433_v2 = vpop.eup %1061 }
 0x255   :  { %1065 = vpow2.f32 %v231_v62  ;;  %238 = vadd.xlane.f32.xlu2 %v237_v27 }
 0x256   :  { %1067 = vpow2.f32 %v345_v30 }
 0x257   :  { %v224_v50 = vpop.xlane.xlu2 %223  ;;  %v469_v32 = vpop.xlane.xlu0 %468 }
 0x258   :  { %v228_v0 = vsub.f32 %v1363_v56, %v224_v50  ;;  %v604_v1 = vpop.xlane.xlu1 %603  ;;  %v477_v14 = vsub.f32 %v1360_v55, %v469_v32 }
 0x259   :  { %v612_v3 = vsub.f32 %v1366_v57, %v604_v1  ;;  %v351_v57 = vsel %vm212_vm2, %v1433_v2, 0.0 }
 0x25a   :  { %v1436_v4 = vpop.eup %1063  ;;  %v235_v5 = vmul.f32 1.442695, %v228_v0  ;;  %v482_v42 = vmul.f32 1.442695, %v477_v14 }
 0x25b   :  { %v1438_v8 = vpop.eup %1065  ;;  %v617_v11 = vmul.f32 1.442695, %v612_v3  ;;  %v488_v13 = vsel %vm212_vm2, %v1436_v4, 0.0 }
 0x25c   :  { %v240_v56 = vsel %vm212_vm2, %v1438_v8, 0.0  ;;  %489 = vadd.xlane.f32.xlu1 %v488_v13  ;;  %1069 = vpow2.f32 %v235_v5  ;;  %v1447_v15 = vpop.eup %1067 }
 0x25d   :  { %241 = vadd.xlane.f32.xlu0 %v240_v56  ;;  %1071 = vpow2.f32 %v617_v11  ;;  %352 = vadd.xlane.f32.xlu2 %v351_v57  ;;  %v354_v23 = vsel %vm212_vm2, %v1447_v15, 0.0 }
 0x25e   :  { %1073 = vpow2.f32 %v482_v42 }
 0x25f   :  { %v338_v37 = vpop.xlane.xlu2 %337  ;;  %v607_v41 = vpop.xlane.xlu0 %606 }
 0x260   :  { %v221_v51 = vpop.xlane.xlu1 %220  ;;  %v342_v43 = vsub.f32 %v1384_v60, %v338_v37 }
 0x261   :  { %v227_v16 = vsub.f32 %v1387_v7, %v221_v51 }
 0x262   :  { %v1450_v19 = vpop.eup %1069  ;;  %v349_v48 = vmul.f32 1.442695, %v342_v43 }
 0x263   :  { %v233_v55 = vmul.f32 1.442695, %v227_v16  ;;  %v1452_v20 = vpop.eup %1071  ;;  %v246_v22 = vsel %vm212_vm2, %v1450_v19, 0.0 }
 0x264   :  { %247 = vadd.xlane.f32.xlu1 %v246_v22  ;;  %v626_v24 = vsel %vm212_vm2, %v1452_v20, 0.0  ;;  %v1460_v7 = vpop.eup %1073 }
 0x265   :  { %355 = vadd.xlane.f32.xlu0 %v354_v23  ;;  %1075 = vpow2.f32 %v233_v55  ;;  %627 = vadd.xlane.f32.xlu2 %v626_v24  ;;  %v491_v25 = vsel %vm212_vm2, %v1460_v7, 0.0 }
 0x267   :  { %v475_v46 = vpop.xlane.xlu2 %474 }
 0x268   :  { %v335_v31 = vpop.xlane.xlu1 %334 }
 0x269   :  { %v341_v36 = vsub.f32 %v1401_v18, %v335_v31 }
 0x26b   :  { %v1462_v52 = vpop.eup %1075  ;;  %v347_v53 = vmul.f32 1.442695, %v341_v36 }
 0x26c   :  { %v243_v26 = vsel %vm212_vm2, %v1462_v52, 0.0 }
 0x26d   :  { %492 = vadd.xlane.f32.xlu2 %v491_v25  ;;  %244 = vadd.xlane.f32.xlu0 %v243_v26  ;;  %1077 = vpow2.f32 %v347_v53 }
 0x270   :  { %v472_v34 = vpop.xlane.xlu1 %471 }
 0x271   :  { %v478_v58 = vsub.f32 %v1409_v54, %v472_v34 }
 0x273   :  { %v1481_v47 = vpop.eup %1077  ;;  %v484_v59 = vmul.f32 1.442695, %v478_v58 }
 0x274   :  { %v357_v18 = vsel %vm212_vm2, %v1481_v47, 0.0 }
 0x278   :  { %v610_v38 = vpop.xlane.xlu1 %609 }
 0x279   :  { %v614_v39 = vsub.f32 %v1414_v33, %v610_v38 }
 0x27b   :  { %v621_v44 = vmul.f32 1.442695, %v614_v39 }
 0x27d   :  { %647 = vrot.lane.b32.xlu1 %v1269_v28, %s1151_s1  ;;  %1079 = vpow2.f32 %v621_v44 }
 0x27e   :  { %1081 = vpow2.f32 %v349_v48 }
 0x281   :  { %645 = vrot.lane.b32.xlu0 %v1274_v29, %s1151_s1 }
 0x283   :  { %v1488_v60 = vpop.eup %1079 }
 0x284   :  { %v1492_v9 = vpop.eup %1081 }
 0x285   :  { %375 = vrot.lane.b32.xlu2 %v1274_v29, %s1147_s24  ;;  %v360_v62 = vsel %vm212_vm2, %v1492_v9, 0.0 }
 0x289   :  { %512 = vrot.lane.b32.xlu0 %v1269_v28, %s1152_s28  ;;  %v613_v28 = vsub.f32 %v1381_v6, %v607_v41  ;;  %v632_v6 = vsel %vm212_vm2, %v1488_v60, 0.0 }
 0x28b   :  { %v619_v49 = vmul.f32 1.442695, %v613_v28 }
 0x28d   :  { %510 = vrot.lane.b32.xlu2 %v1274_v29, %s1152_s28  ;;  %v479_v29 = vsub.f32 %v1398_v17, %v475_v46  ;;  %1083 = vpow2.f32 %v619_v49 }
 0x28f   :  { %v486_v33 = vmul.f32 1.442695, %v479_v29 }
 0x291   :  { %1085 = vpow2.f32 %v486_v33 }
 0x292   :  { %1087 = vpow2.f32 %v484_v59 }
 0x293   :  { %v1494_v17 = vpop.eup %1083 }
 0x294   :  { %v629_v54 = vsel %vm212_vm2, %v1494_v17, 0.0 }
 0x297   :  { %v1498_v12 = vpop.eup %1085 }
 0x298   :  { %v497_v10 = vsel %vm212_vm2, %v1498_v12, 0.0  ;;  %v1504_v27 = vpop.eup %1087 }
 0x299   :  { %v494_v30 = vsel %vm212_vm2, %v1504_v27, 0.0 }
 0x2a7   :  { %358 = vadd.xlane.f32.xlu1 %v357_v18 }
 0x2af   :  { %633 = vadd.xlane.f32.xlu1 %v632_v6 }
 0x2b3   :  { %361 = vadd.xlane.f32.xlu0 %v360_v62 }
 0x2b6   :  { %630 = vadd.xlane.f32.xlu2 %v629_v54 }
 0x2b7   :  { %498 = vadd.xlane.f32.xlu1 %v497_v10 }
 0x2bb   :  { %495 = vadd.xlane.f32.xlu0 %v494_v30 }
 0x2c7   :  { %v625_v0 = vpop.xlane.xlu1 %624 }
 0x2c8   :  { %v239_v50 = vpop.xlane.xlu2 %238 }
 0x2c9   :  { %1089 = vrcp.f32 %v239_v50 }
 0x2cf   :  { %v490_v3 = vpop.xlane.xlu1 %489  ;;  %v1090_v5 = vpop.eup %1089 }
 0x2d0   :  { %v242_v1 = vpop.xlane.xlu0 %241  ;;  %v353_v32 = vpop.xlane.xlu2 %352  ;;  %v253_v13 = vmul.f32 %v1090_v5, %v1428_v40 }
 0x2d1   :  { %1091 = vrcp.f32 %v242_v1 }
 0x2d7   :  { %v1092_v11 = vpop.eup %1091  ;;  %v248_v51 = vpop.xlane.xlu1 %247 }
 0x2d8   :  { %v254_v14 = vmul.f32 %v1092_v11, %v1438_v8  ;;  %v356_v56 = vpop.xlane.xlu0 %355  ;;  %v628_v57 = vpop.xlane.xlu2 %627 }
 0x2d9   :  { %1093 = vrcp.f32 %v356_v56 }
 0x2da   :  { %v257_v42 = vpack.c.bf16 %v254_v14, %v253_v13  ;;  %1095 = vrcp.f32 %v353_v32 }
 0x2db   :  { %1097 = vrcp.f32 %v248_v51 }
 0x2dc   :  { %985 = vmatmul.msk.bf16.vlgmr.msrb.gmra.mxu2 %vm212_vm2, %v257_v42 }
 0x2df   :  { %v1094_v22 = vpop.eup %1093 }
 0x2e0   :  { %v493_v16 = vpop.xlane.xlu2 %492  ;;  %v245_v55 = vpop.xlane.xlu0 %244  ;;  %v368_v25 = vmul.f32 %v1094_v22, %v1447_v15 }
 0x2e1   :  { %1099 = vrcp.f32 %v245_v55  ;;  %v1096_v23 = vpop.eup %1095 }
 0x2e2   :  { %v1098_v24 = vpop.eup %1097  ;;  %v367_v8 = vmul.f32 %v1096_v23, %v1433_v2  ;;  %1101 = vrcp.f32 %v628_v57 }
 0x2e3   :  { %v256_v34 = vmul.f32 %v1098_v24, %v1450_v19  ;;  %1103 = vrcp.f32 %v625_v0  ;;  %v748_v24 = vld [vmem:[%s1699_s5 + $0x78] sm:$0xff] }
 0x2e4   :  { %v371_v36 = vpack.c.bf16 %v368_v25, %v367_v8  ;;  %1105 = vrcp.f32 %v493_v16  ;;  %v747_v25 = vld [vmem:[%s1699_s5 + $0x70] sm:$0xff]  ;;  %v744_v8 = vld [vmem:[%s1699_s5 + $0x58] sm:$0xff] }
 0x2e5   :  { %1107 = vrcp.f32 %v490_v3 }
 0x2e7   :  { %v1100_v40 = vpop.eup %1099 }
 0x2e8   :  { %v376_v26 = vpop.permute.xlu2 %375  ;;  %v255_v31 = vmul.f32 %v1100_v40, %v1462_v52  ;;  %v1102_v38 = vpop.eup %1101  ;;  %v746_v40 = vld [vmem:[%s1699_s5 + $0x68] sm:$0xff] }
 0x2e9   :  { %394 = vmatpush.bf16.msra.mxu3 %v376_v26  ;;  %v1104_v2 = vpop.eup %1103  ;;  %v640_v52 = vmul.f32 %v1102_v38, %v1452_v20  ;;  %v745_v26 = vld [vmem:[%s1699_s5 + $0x60] sm:$0xff] }
 0x2ea   :  { %v258_v37 = vpack.c.bf16 %v256_v34, %v255_v31  ;;  %v639_v19 = vmul.f32 %v1104_v2, %v1423_v45  ;;  %v1106_v39 = vpop.eup %1105  ;;  %v743_v31 = vld [vmem:[%s1699_s5 + $0x50] sm:$0xff]  ;;  %v742_v34 = vld [vmem:[%s1699_s5 + $0x48] sm:$0xff]  ;;  %v737_v38 = vld [vmem:[%s1699_s5 + $0x20] sm:$0xff] }
 0x2eb   :  { %v1108_v44 = vpop.eup %1107  ;;  %v505_v46 = vmul.f32 %v1106_v39, %v1460_v7  ;;  %v735_v39 = vld [vmem:[%s1699_s5 + $0x10] sm:$0xff] }
 0x2ec   :  { %987 = vmatmul.msk.bf16.vlgmr.msra.gmra.mxu3 %vm212_vm2, %v371_v36  ;;  %986 = vmatmul.msk.bf16.gmra.mxu2 %vm212_vm2, %v258_v37  ;;  %v643_v41 = vpack.c.bf16 %v640_v52, %v639_v19  ;;  %v504_v28 = vmul.f32 %v1108_v44, %v1436_v4  ;;  %v741_v36 = vld [vmem:[%s1699_s5 + $0x40] sm:$0xff]  ;;  %v740_v37 = vld [vmem:[%s1699_s5 + $0x38] sm:$0xff] }
 0x2ed   :  { %749 = vmatpush.msrb.mxu3 %v748_v24  ;;  %v736_v19 = vld [vmem:[%s1699_s5 + $0x18] sm:$0xff]  ;;  %v783_v24 = vld [vmem:[%s1700_s6 + $0x28] sm:$0xff] }
 0x2ee   :  { %v508_v29 = vpack.c.bf16 %v505_v46, %v504_v28 }
 0x2ef   :  { %v648_v53 = vpop.permute.xlu1 %647  ;;  %750 = vmatpush.msrb.mxu3 %v747_v25 }
 0x2f0   :  { %663 = vmatpush.bf16.msra.mxu2 %v648_v53  ;;  %v511_v48 = vpop.permute.xlu2 %510  ;;  %v739_v53 = vld [vmem:[%s1699_s5 + $0x30] sm:$0xff] }
 0x2f1   :  { %751 = vmatpush.msrb.mxu3 %v746_v40 }
 0x2f3   :  { %v646_v15 = vpop.permute.xlu0 %645  ;;  %752 = vmatpush.msrb.mxu3 %v745_v26  ;;  %v782_v26 = vld [vmem:[%s1700_s6 + $0x20] sm:$0xff] }
 0x2f4   :  { %664 = vmatpush.bf16.msra.mxu2 %v646_v15  ;;  %v738_v15 = vld [vmem:[%s1699_s5 + $0x28] sm:$0xff] }
 0x2f5   :  { %753 = vmatpush.msrb.mxu3 %v744_v8 }
 0x2f7   :  { %754 = vmatpush.msrb.mxu3 %v743_v31  ;;  %v781_v31 = vld [vmem:[%s1700_s6 + $0x18] sm:$0xff] }
 0x2f9   :  { %755 = vmatpush.msrb.mxu3 %v742_v34 }
 0x2fb   :  { %v513_v43 = vpop.permute.xlu0 %512  ;;  %756 = vmatpush.msrb.mxu3 %v741_v36  ;;  %v780_v36 = vld [vmem:[%s1700_s6 + $0x10] sm:$0xff] }
 0x2fc   :  { %528 = vmatpush.bf16.msrb.mxu0 %v513_v43  ;;  %991 = vmatmul.msk.bf16.vlgmr.msra.gmra.mxu2 %vm212_vm2, %v643_v41  ;;  %v734_v41 = vld [vmem:[%s1699_s5 + $0x8] sm:$0xff]  ;;  %v733_v43 = vld [vmem:[%s1699_s5] sm:$0xff] }
 0x2fd   :  { %757 = vmatpush.msrb.mxu3 %v740_v37  ;;  %v779_v37 = vld [vmem:[%s1700_s6 + $0x8] sm:$0xff] }
 0x2ff   :  { %758 = vmatpush.msrb.mxu3 %v739_v53 }
 0x300   :  { %529 = vmatpush.bf16.msrb.mxu0 %v511_v48  ;;  %v1604_v48 = vld [vmem:[%s1698_s4] ss:$0 sm:$0xff] }
 0x301   :  { %759 = vmatpush.msrb.mxu3 %v738_v15 }
 0x303   :  { %989 = vmatmul.msk.bf16.vlgmr.msrb.gmra.mxu0 %vm212_vm2, %v508_v29  ;;  %760 = vmatpush.msrb.mxu3 %v737_v38 }
 0x305   :  { %761 = vmatpush.msrb.mxu3 %v736_v19 }
 0x307   :  { %762 = vmatpush.msrb.mxu3 %v735_v39  ;;  %v1153_v39 = vmov 1  }
 0x308   :  { %1052 = vset.pattern.permute.xlu1 %v1153_v39  ;;  %1053 = vset.pattern.permute.xlu2 %v1153_v39 }
 0x309   :  { %763 = vmatpush.msrb.mxu3 %v734_v41  ;;  %1054 = vset.pattern.permute.xlu0 %v1153_v39 }
 0x30b   :  { %764 = vmatpush.msrb.mxu3 %v733_v43 }
 0x31a   :  { %v359_v18 = vpop.xlane.xlu1 %358 }
 0x31b   :  { %1109 = vrcp.f32 %v359_v18 }
 0x321   :  { %v1110_v58 = vpop.eup %1109 }
 0x322   :  { %v634_v20 = vpop.xlane.xlu1 %633  ;;  %v369_v4 = vmul.f32 %v1110_v58, %v1481_v47 }
 0x326   :  { %v362_v45 = vpop.xlane.xlu0 %361 }
 0x327   :  { %1111 = vrcp.f32 %v362_v45 }
 0x328   :  { %1113 = vrcp.f32 %v634_v20 }
 0x329   :  { %v631_v49 = vpop.xlane.xlu2 %630 }
 0x32a   :  { %1115 = vrcp.f32 %v631_v49  ;;  %v499_v33 = vpop.xlane.xlu1 %498 }
 0x32b   :  { %1117 = vrcp.f32 %v499_v33 }
 0x32d   :  { %v1112_v7 = vpop.eup %1111 }
 0x32e   :  { %v1114_v59 = vpop.eup %1113  ;;  %v496_v6 = vpop.xlane.xlu0 %495  ;;  %v370_v62 = vmul.f32 %v1112_v7, %v1492_v9 }
 0x32f   :  { %1119 = vrcp.f32 %v496_v6  ;;  %v642_v50 = vmul.f32 %v1114_v59, %v1488_v60 }
 0x330   :  { %v1116_v54 = vpop.eup %1115  ;;  %v372_v10 = vpack.c.bf16 %v370_v62, %v369_v4 }
 0x331   :  { %v641_v30 = vmul.f32 %v1116_v54, %v1494_v17  ;;  %v1118_v0 = vpop.eup %1117 }
 0x332   :  { %988 = vmatmul.msk.bf16.gmra.mxu3 %vm212_vm2, %v372_v10  ;;  %v507_v47 = vmul.f32 %v1118_v0, %v1498_v12 }
 0x333   :  { %v644_v1 = vpack.c.bf16 %v642_v50, %v641_v30 }
 0x335   :  { %v1120_v32 = vpop.eup %1119  ;;  %992 = vmatmul.msk.bf16.gmra.mxu2 %vm212_vm2, %v644_v1 }
 0x336   :  { %v506_v3 = vmul.f32 %v1120_v32, %v1504_v27  ;;  %v793_v32 = vld [vmem:[%s1700_s6 + $0x78] sm:$0xff] }
 0x337   :  { %794 = vmatpush.msrb.mxu1 %v793_v32  ;;  %1010 = vmatpush.msra.mxu3 %v793_v32 }
 0x338   :  { %v509_v5 = vpack.c.bf16 %v507_v47, %v506_v3  ;;  %v792_v3 = vld [vmem:[%s1700_s6 + $0x70] sm:$0xff]  ;;  %v791_v47 = vld [vmem:[%s1700_s6 + $0x68] sm:$0xff] }
 0x339   :  { %795 = vmatpush.msrb.mxu1 %v792_v3  ;;  %1011 = vmatpush.msra.mxu3 %v792_v3 }
 0x33a   :  { %990 = vmatmul.msk.bf16.gmra.mxu0 %vm212_vm2, %v509_v5 }
 0x33b   :  { %796 = vmatpush.msrb.mxu1 %v791_v47  ;;  %1012 = vmatpush.msra.mxu3 %v791_v47 }
 0x35f   :  { %v276_v9 = vpop.f32.mrf.mxu2 }
 0x360   :  { %286 = vst.msk [vmem:[#allocation2] sm:$0xff] %vm212_vm2, %v276_v9  ;;  %v790_v9 = vld [vmem:[%s1700_s6 + $0x60] sm:$0xff] }
 0x361   :  { %797 = vmatpush.msrb.mxu1 %v790_v9  ;;  %1013 = vmatpush.msra.mxu3 %v790_v9 }
 0x367   :  { %v278_v17 = vpop.f32.mrf.mxu2 }
 0x368   :  { %287 = vst.msk [vmem:[#allocation2 + $0x8] sm:$0xff] %vm212_vm2, %v278_v17 }
 0x36f   :  { %v396_v60 = vpop.f32.mrf.mxu3  ;;  %v281_v11 = vpop.f32.mrf.mxu2 }
 0x370   :  { %410 = vrot.lane.b32.xlu0 %v396_v60, %s1151_s1  ;;  %288 = vst.msk [vmem:[#allocation2 + $0x10] sm:$0xff] %vm212_vm2, %v281_v11  ;;  %v789_v60 = vld [vmem:[%s1700_s6 + $0x58] sm:$0xff] }
 0x371   :  { %798 = vmatpush.msrb.mxu1 %v789_v60  ;;  %1014 = vmatpush.msra.mxu3 %v789_v60 }
 0x377   :  { %v398_v13 = vpop.f32.mrf.mxu3  ;;  %v283_v14 = vpop.f32.mrf.mxu2 }
 0x378   :  { %412 = vrot.lane.b32.xlu0 %v398_v13, %s1151_s1  ;;  %289 = vst.msk [vmem:[#allocation2 + $0x18] sm:$0xff] %vm212_vm2, %v283_v14 }
 0x37f   :  { %v666_v12 = vpop.f32.mrf.mxu2 }
 0x380   :  { %v531_v27 = vpop.f32.mrf.mxu0  ;;  %680 = vrot.lane.b32.xlu1 %v666_v12, %s1147_s24  ;;  %v788_v12 = vld [vmem:[%s1700_s6 + $0x50] sm:$0xff] }
 0x381   :  { %545 = vrot.lane.b32.xlu2 %v531_v27, %s1152_s28  ;;  %799 = vmatpush.msrb.mxu1 %v788_v12 }
 0x382   :  { %1015 = vmatpush.msra.mxu3 %v788_v12 }
 0x387   :  { %v668_v56 = vpop.f32.mrf.mxu2 }
 0x388   :  { %v533_v57 = vpop.f32.mrf.mxu0  ;;  %682 = vrot.lane.b32.xlu0 %v668_v56, %s1147_s24  ;;  %v787_v56 = vld [vmem:[%s1700_s6 + $0x48] sm:$0xff] }
 0x389   :  { %547 = vrot.lane.b32.xlu2 %v533_v57, %s1152_s28  ;;  %800 = vmatpush.msrb.mxu1 %v787_v56 }
 0x38a   :  { %1016 = vmatpush.msra.mxu3 %v787_v56 }
 0x3b5   :  { %v401_v42 = vpop.f32.mrf.mxu3 }
 0x3b6   :  { %414 = vrot.lane.b32.xlu1 %v401_v42, %s1151_s1  ;;  %v786_v42 = vld [vmem:[%s1700_s6 + $0x40] sm:$0xff] }
 0x3b7   :  { %v536_v51 = vpop.f32.mrf.mxu0  ;;  %801 = vmatpush.msrb.mxu1 %v786_v42  ;;  %1017 = vmatpush.msra.mxu3 %v786_v42 }
 0x3b8   :  { %v671_v16 = vpop.f32.mrf.mxu2  ;;  %549 = vrot.lane.b32.xlu2 %v536_v51, %s1152_s28  ;;  %v785_v51 = vld [vmem:[%s1700_s6 + $0x38] sm:$0xff] }
 0x3b9   :  { %684 = vrot.lane.b32.xlu0 %v671_v16, %s1147_s24  ;;  %802 = vmatpush.msrb.mxu1 %v785_v51 }
 0x3ba   :  { %1018 = vmatpush.msra.mxu3 %v785_v51 }
 0x3bd   :  { %v403_v55 = vpop.f32.mrf.mxu3 }
 0x3be   :  { %416 = vrot.lane.b32.xlu1 %v403_v55, %s1151_s1 }
 0x3bf   :  { %v538_v22 = vpop.f32.mrf.mxu0 }
 0x3c0   :  { %v673_v23 = vpop.f32.mrf.mxu2  ;;  %551 = vrot.lane.b32.xlu2 %v538_v22, %s1152_s28  ;;  %v784_v22 = vld [vmem:[%s1700_s6 + $0x30] sm:$0xff] }
 0x3c1   :  { %686 = vrot.lane.b32.xlu0 %v673_v23, %s1147_s24  ;;  %803 = vmatpush.msrb.mxu1 %v784_v22 }
 0x3c2   :  { %1019 = vmatpush.msra.mxu3 %v784_v22 }
 0x3c3   :  { %804 = vmatpush.msrb.mxu1 %v783_v24 }
 0x3c4   :  { %1020 = vmatpush.msra.mxu3 %v783_v24 }
 0x3c5   :  { %805 = vmatpush.msrb.mxu1 %v782_v26 }
 0x3c6   :  { %1021 = vmatpush.msra.mxu3 %v782_v26 }
 0x3c7   :  { %806 = vmatpush.msrb.mxu1 %v781_v31 }
 0x3c8   :  { %1022 = vmatpush.msra.mxu3 %v781_v31 }
 0x3c9   :  { %807 = vmatpush.msrb.mxu1 %v780_v36 }
 0x3ca   :  { %1023 = vmatpush.msra.mxu3 %v780_v36 }
 0x3cb   :  { %808 = vmatpush.msrb.mxu1 %v779_v37 }
 0x3cc   :  { %1024 = vmatpush.msra.mxu3 %v779_v37 }
 0x3db   :  { %v546_v2 = vpop.permute.xlu2 %545 }
 0x3e2   :  { %v411_v52 = vpop.permute.xlu0 %410 }
 0x3e3   :  { %423 = vst.msk [vmem:[#allocation2] sm:$0xff] %vm422_vm7, %v411_v52  ;;  %v548_v46 = vpop.permute.xlu2 %547 }
 0x3e4   :  { %558 = vst.msk [vmem:[#allocation2] sm:$0xff] %vm557_vm8, %v546_v2  ;;  %v778_v2 = vld [vmem:[%s1700_s6] sm:$0xff] }
 0x3e5   :  { %809 = vmatpush.msrb.mxu1 %v778_v2  ;;  %1025 = vmatpush.msra.mxu3 %v778_v2 }
 0x3ea   :  { %v413_v44 = vpop.permute.xlu0 %412 }
 0x3eb   :  { %424 = vst.msk [vmem:[#allocation2 + $0x8] sm:$0xff] %vm422_vm7, %v413_v44 }
 0x3ec   :  { %559 = vst.msk [vmem:[#allocation2 + $0x8] sm:$0xff] %vm557_vm8, %v548_v46 }
 0x3f2   :  { %v681_v28 = vpop.permute.xlu1 %680 }
 0x3f3   :  { %693 = vst.msk [vmem:[#allocation2] sm:$0xff] %vm692_vm9, %v681_v28 }
 0x3fa   :  { %v683_v29 = vpop.permute.xlu0 %682  ;;  %v697_v18 = vld [vmem:[#allocation2] sm:$0xff] }
 0x3fb   :  { %694 = vst.msk [vmem:[#allocation2 + $0x8] sm:$0xff] %vm692_vm9, %v683_v29  ;;  %v705_v20 = vadd.f32 %v1604_v48, %v697_v18 }
 0x3fd   :  { %v713_v45 = vmin.f32 %v705_v20, 0.0  ;;  %vm709_vm10 = vcmp.gt.f32.partialorder %v705_v20, 0.0 }
 0x3ff   :  { %v717_v49 = vmul.f32 1.442695, %v713_v45 }
 0x401   :  { %1121 = vpow2.f32 %v717_v49 }
 0x402   :  { %v698_v33 = vld [vmem:[#allocation2 + $0x8] sm:$0xff] }
 0x403   :  { %v706_v58 = vadd.f32 %v1604_v48, %v698_v33 }
 0x405   :  { %v714_v7 = vmin.f32 %v706_v58, 0.0  ;;  %vm710_vm11 = vcmp.gt.f32.partialorder %v706_v58, 0.0 }
 0x407   :  { %v1122_v59 = vpop.eup %1121  ;;  %v719_v6 = vmul.f32 1.442695, %v714_v7 }
 0x408   :  { %v993_v4 = vadd.f32 -1.0, %v1122_v59 }
 0x409   :  { %1123 = vpow2.f32 %v719_v6 }
 0x40a   :  { %v729_v62 = vsel %vm709_vm10, %v705_v20, %v993_v4 }
 0x40b   :  { %765 = vmatmul.f32.vlgmr.msrb.gmra.mxu3 %v729_v62 }
 0x40f   :  { %v1124_v54 = vpop.eup %1123 }
 0x410   :  { %v994_v10 = vadd.f32 -1.0, %v1124_v54 }
 0x412   :  { %v730_v30 = vsel %vm710_vm11, %v706_v58, %v994_v10  ;;  %v550_v50 = vpop.permute.xlu2 %549 }
 0x413   :  { %768 = vmatmul.f32.gmra.mxu3 %v730_v30 }
 0x41a   :  { %v552_v17 = vpop.permute.xlu2 %551 }
 0x428   :  { %v415_v0 = vpop.permute.xlu1 %414 }
 0x429   :  { %425 = vst.msk [vmem:[#allocation2 + $0x10] sm:$0xff] %vm422_vm7, %v415_v0 }
 0x42a   :  { %560 = vst.msk [vmem:[#allocation2 + $0x10] sm:$0xff] %vm557_vm8, %v550_v50 }
 0x42b   :  { %v685_v1 = vpop.permute.xlu0 %684 }
 0x42c   :  { %695 = vst.msk [vmem:[#allocation2 + $0x10] sm:$0xff] %vm692_vm9, %v685_v1 }
 0x430   :  { %v417_v5 = vpop.permute.xlu1 %416 }
 0x431   :  { %426 = vst.msk [vmem:[#allocation2 + $0x18] sm:$0xff] %vm422_vm7, %v417_v5 }
 0x432   :  { %561 = vst.msk [vmem:[#allocation2 + $0x18] sm:$0xff] %vm557_vm8, %v552_v17 }
 0x433   :  { %v687_v11 = vpop.permute.xlu0 %686  ;;  %v699_v13 = vld [vmem:[#allocation2 + $0x10] sm:$0xff] }
 0x434   :  { %696 = vst.msk [vmem:[#allocation2 + $0x18] sm:$0xff] %vm692_vm9, %v687_v11  ;;  %v707_v14 = vadd.f32 %v1604_v48, %v699_v13 }
 0x436   :  { %v715_v27 = vmin.f32 %v707_v14, 0.0  ;;  %vm711_vm12 = vcmp.gt.f32.partialorder %v707_v14, 0.0 }
 0x438   :  { %v721_v57 = vmul.f32 1.442695, %v715_v27 }
 0x43a   :  { %1125 = vpow2.f32 %v721_v57 }
 0x43b   :  { %v700_v16 = vld [vmem:[#allocation2 + $0x18] sm:$0xff] }
 0x43c   :  { %v708_v55 = vadd.f32 %v1604_v48, %v700_v16 }
 0x43e   :  { %v716_v23 = vmin.f32 %v708_v55, 0.0  ;;  %vm712_vm13 = vcmp.gt.f32.partialorder %v708_v55, 0.0 }
 0x440   :  { %v1126_v25 = vpop.eup %1125  ;;  %v723_v40 = vmul.f32 1.442695, %v716_v23 }
 0x441   :  { %v995_v8 = vadd.f32 -1.0, %v1126_v25 }
 0x442   :  { %1127 = vpow2.f32 %v723_v40 }
 0x443   :  { %v731_v34 = vsel %vm711_vm12, %v707_v14, %v995_v8 }
 0x444   :  { %771 = vmatmul.f32.gmra.mxu3 %v731_v34 }
 0x448   :  { %v1128_v53 = vpop.eup %1127 }
 0x449   :  { %v996_v15 = vadd.f32 -1.0, %v1128_v53 }
 0x44b   :  { %v732_v38 = vsel %vm712_vm13, %v708_v55, %v996_v15 }
 0x44c   :  { %774 = vmatmul.f32.gmra.mxu3 %v732_v38 }
 0x48e   :  { %v766_v52 = vpop.f32.mrf.mxu3 }
 0x48f   :  { %810 = vmatmul.f32.vlgmr.msrb.gmra.mxu1 %v766_v52 }
 0x496   :  { %v769_v19 = vpop.f32.mrf.mxu3 }
 0x497   :  { %813 = vmatmul.f32.gmra.mxu1 %v769_v19  ;;  %v942_v46 = vpack.c.bf16 %v769_v19, %v766_v52 }
 0x4c7   :  { %v772_v41 = vpop.f32.mrf.mxu3 }
 0x4c8   :  { %816 = vmatmul.f32.gmra.mxu1 %v772_v41 }
 0x4cf   :  { %v775_v43 = vpop.f32.mrf.mxu3 }
 0x4d0   :  { %v943_v44 = vpack.c.bf16 %v775_v43, %v772_v41  ;;  %819 = vmatmul.f32.vlgmr.msra.gmra.mxu3 %v775_v43 }
 0x4d2   :  { %960 = vmatpush.bf16.msra.mxu0 %v943_v44 }
 0x4d6   :  { %961 = vmatpush.bf16.msra.mxu0 %v942_v46 }
 0x50c   :  { %v811_v28 = vpop.f32.mrf.mxu1 }
 0x50d   :  { %857 = vperm.xlu1 %1052, %v811_v28  }
 0x514   :  { %v814_v48 = vpop.f32.mrf.mxu1 }
 0x515   :  { %862 = vperm.xlu2 %1053, %v814_v48  }
 0x53b   :  { %823 = vxpose.xlu2.b32.start [1/4] (short) (narrow) %v811_v28, 8  ;;  %v1056_v28 = vld [vmem:[%s1701_s7] ss:$0 sm:$0xff] }
 0x543   :  { %824 = vxpose.xlu2.b32.cont [2/4] (short) (narrow) %v814_v48, 8 }
 0x545   :  { %v817_v29 = vpop.f32.mrf.mxu1 }
 0x546   :  { %867 = vperm.xlu0 %1054, %v817_v29  }
 0x54b   :  { %825 = vxpose.xlu2.b32.cont [3/4] (short) (narrow) %v817_v29, 8 }
 0x553   :  { %v820_v18 = vpop.f32.mrf.mxu3 }
 0x554   :  { %826 = vxpose.xlu2.b32.end [4/4] (short) (narrow) %v820_v18, 8  ;;  %872 = vperm.xlu1 %1052, %v820_v18  }
 0x56f   :  { %v863_v20 = vpop.permute.xlu2 %862 }
 0x57f   :  { %v858_v45 = vpop.permute.xlu1 %857 }
 0x5b8   :  { %v868_v58 = vpop.permute.xlu0 %867 }
 0x5c6   :  { %v873_v7 = vpop.permute.xlu1 %872 }
 0x5d5   :  { %v839_v49 = vpop.trf.xlu2 }
 0x5d6   :  { %v875_v33 = vperm.slane %v839_v49, 0 }
 0x5d8   :  { %v877_v59 = vadd.f32 %v875_v33, %v863_v20  ;;  %v876_v6 = vadd.f32 %v875_v33, %v858_v45  ;;  %v878_v4 = vadd.f32 %v875_v33, %v868_v58  ;;  %v879_v62 = vadd.f32 %v875_v33, %v873_v7 }
 0x5da   :  { %vm881_vm14 = vcmp.gt.f32.partialorder %v877_v59, 0.0  ;;  %v885_v54 = vmul.f32 0.2, %v877_v59  ;;  %vm880_vm15 = vcmp.gt.f32.partialorder %v876_v6, 0.0  ;;  %v884_v10 = vmul.f32 0.2, %v876_v6 }
 0x5db   :  { %v886_v0 = vmul.f32 0.2, %v878_v4  ;;  %v887_v1 = vmul.f32 0.2, %v879_v62  ;;  %vm882_vm0 = vcmp.gt.f32.partialorder %v878_v4, 0.0  ;;  %vm883_vm1 = vcmp.gt.f32.partialorder %v879_v62, 0.0 }
 0x5dc   :  { %v889_v30 = vsel %vm881_vm14, %v877_v59, %v885_v54  ;;  %v888_v50 = vsel %vm880_vm15, %v876_v6, %v884_v10 }
 0x5dd   :  { %v893_v32 = vadd.f32 %v889_v30, %v1332_v21  ;;  %v892_v3 = vadd.f32 %v888_v50, %v1301_v61  ;;  %v890_v9 = vsel %vm882_vm0, %v878_v4, %v886_v0  ;;  %v891_v17 = vsel %vm883_vm1, %v879_v62, %v887_v1 }
 0x5de   :  { %v894_v60 = vadd.f32 %v890_v9, %v1373_v63  ;;  %v895_v11 = vadd.f32 %v891_v17, %v1346_v35 }
 0x5df   :  { %v899_v47 = vsel %vm212_vm2, %v893_v32, -inf  ;;  %v896_v5 = vsel %vm212_vm2, %v892_v3, -inf }
 0x5e0   :  { %900 = vmax.xlane.f32.xlu0 %v899_v47  ;;  %897 = vmax.xlane.f32.xlu1 %v896_v5  ;;  %v902_v13 = vsel %vm212_vm2, %v894_v60, -inf  ;;  %v905_v21 = vsel %vm212_vm2, %v895_v11, -inf }
 0x5e8   :  { %903 = vmax.xlane.f32.xlu1 %v902_v13  ;;  %906 = vmax.xlane.f32.xlu0 %v905_v21 }
 0x653   :  { %v901_v61 = vpop.xlane.xlu0 %900  ;;  %v898_v14 = vpop.xlane.xlu1 %897 }
 0x654   :  { %v909_v12 = vsub.f32 %v893_v32, %v901_v61  ;;  %v908_v27 = vsub.f32 %v892_v3, %v898_v14 }
 0x656   :  { %v914_v56 = vmul.f32 1.442695, %v909_v12  ;;  %v912_v57 = vmul.f32 1.442695, %v908_v27 }
 0x658   :  { %1129 = vpow2.f32 %v914_v56 }
 0x659   :  { %1131 = vpow2.f32 %v912_v57 }
 0x65b   :  { %v907_v42 = vpop.xlane.xlu0 %906  ;;  %v904_v51 = vpop.xlane.xlu1 %903 }
 0x65c   :  { %v911_v16 = vsub.f32 %v895_v11, %v907_v42  ;;  %v910_v63 = vsub.f32 %v894_v60, %v904_v51 }
 0x65e   :  { %v1130_v55 = vpop.eup %1129  ;;  %v918_v35 = vmul.f32 1.442695, %v911_v16  ;;  %v916_v22 = vmul.f32 1.442695, %v910_v63 }
 0x65f   :  { %v1132_v23 = vpop.eup %1131  ;;  %v923_v24 = vsel %vm212_vm2, %v1130_v55, 0.0 }
 0x660   :  { %1133 = vpow2.f32 %v918_v35  ;;  %924 = vadd.xlane.f32.xlu0 %v923_v24  ;;  %v920_v25 = vsel %vm212_vm2, %v1132_v23, 0.0 }
 0x661   :  { %1135 = vpow2.f32 %v916_v22  ;;  %921 = vadd.xlane.f32.xlu1 %v920_v25 }
 0x666   :  { %v1134_v40 = vpop.eup %1133 }
 0x667   :  { %v1136_v26 = vpop.eup %1135  ;;  %v929_v8 = vsel %vm212_vm2, %v1134_v40, 0.0 }
 0x668   :  { %v926_v31 = vsel %vm212_vm2, %v1136_v26, 0.0 }
 0x669   :  { %930 = vadd.xlane.f32.xlu1 %v929_v8  ;;  %927 = vadd.xlane.f32.xlu2 %v926_v31 }
 0x6d3   :  { %v925_v34 = vpop.xlane.xlu0 %924 }
 0x6d4   :  { %1137 = vrcp.f32 %v925_v34  ;;  %v922_v36 = vpop.xlane.xlu1 %921 }
 0x6d5   :  { %1139 = vrcp.f32 %v922_v36 }
 0x6da   :  { %v1138_v37 = vpop.eup %1137 }
 0x6db   :  { %v1140_v53 = vpop.eup %1139  ;;  %v937_v15 = vmul.f32 %v1138_v37, %v1130_v55 }
 0x6dc   :  { %v936_v38 = vmul.f32 %v1140_v53, %v1132_v23  ;;  %v928_v2 = vpop.xlane.xlu2 %927  ;;  %v931_v19 = vpop.xlane.xlu1 %930 }
 0x6dd   :  { %1141 = vrcp.f32 %v928_v2 }
 0x6de   :  { %v940_v52 = vpack.c.bf16 %v937_v15, %v936_v38  ;;  %1143 = vrcp.f32 %v931_v19 }
 0x6e0   :  { %997 = vmatmul.msk.bf16.vlgmr.msra.gmra.mxu0 %vm212_vm2, %v940_v52 }
 0x6e3   :  { %v1142_v39 = vpop.eup %1141 }
 0x6e4   :  { %v1144_v41 = vpop.eup %1143  ;;  %v938_v43 = vmul.f32 %v1142_v39, %v1136_v26 }
 0x6e5   :  { %v939_v44 = vmul.f32 %v1144_v41, %v1134_v40 }
 0x6e7   :  { %v941_v46 = vpack.c.bf16 %v939_v44, %v938_v43 }
 0x6f0   :  { %998 = vmatmul.msk.bf16.gmra.mxu0 %vm212_vm2, %v941_v46 }
 0x75d   :  { %v963_v48 = vpop.f32.mrf.mxu0 }
 0x75e   :  { %v964_v29 = vadd.f32 %v1056_v28, %v963_v48 }
 0x760   :  { %973 = vst [vmem:[%s1702_s8] sm:$0xff] %v964_v29 }
 0x765   :  { %v965_v18 = vpop.f32.mrf.mxu0 }
 0x766   :  { %v966_v20 = vadd.f32 %v1056_v28, %v965_v18 }
 0x768   :  { %974 = vst [vmem:[%s1702_s8 + $0x8] sm:$0xff] %v966_v20 }
 0x76d   :  { %v968_v45 = vpop.f32.mrf.mxu0 }
 0x76e   :  { %v969_v49 = vadd.f32 %v1056_v28, %v968_v45 }
 0x770   :  { %975 = vst [vmem:[%s1702_s8 + $0x10] sm:$0xff] %v969_v49 }
 0x775   :  { %v970_v33 = vpop.f32.mrf.mxu0 }
 0x776   :  { %v971_v58 = vadd.f32 %v1056_v28, %v970_v33 }
 0x778   :  { %976 = vst [vmem:[%s1702_s8 + $0x18] sm:$0xff] %v971_v58 }

</bundles_post_ra>
